<compile_context>
chip_gen: v6e
topology: v6e:2x2x1
jax: 0.10.0
libtpu: 0.0.40
codegen_flags: <defaults>
</compile_context>

<pallas_src>
import functools

import jax
import jax.numpy as jnp
from jax import lax
from jax.experimental import pallas as pl
from jax.experimental.pallas import tpu as pltpu


# ----------------------------------------------------------------------------
# Fused Pallas kernel: all GRU layers (both directions) + MLP head + sigmoid
# ----------------------------------------------------------------------------
def fused_rnn_kernel(*refs, T, B_pad, H, num_layers, num_mlp_layers):
    out_ref = refs[-1]
    x_ref, len_ref = refs[0], refs[1]
    layer_refs = [refs[2 + 4 * l: 2 + 4 * (l + 1)] for l in range(num_layers)]
    head_refs = refs[2 + 4 * num_layers:-1]

    f32 = jnp.float32
    H2, H4 = 2 * H, 4 * H

    # --- packed-sequence masks & last-valid selectors (booleans, built ONCE, off the chain) --
    # Combined-stream convention: at step s the fwd half (lanes [0,H)) processes time s and
    # the bwd half (lanes [H,2H)) processes time T-1-s.
    lens = jnp.broadcast_to(len_ref[...], (B_pad, H2))                 # (B_pad, 2H) int32
    lane = lax.broadcasted_iota(jnp.int32, (B_pad, H2), 1)
    is_fwd = lane < H
    mask_steps, sel_steps = [], []
    for s in range(T):
        t_eff = jnp.where(is_fwd, s, T - 1 - s)                        # time seen by each half
        mask_steps.append(t_eff < lens)                                # active while t < len[b]
        sel_steps.append(t_eff == lens - 1)                            # one-hot at t == len[b]-1

    # Layer-0 combined-stream slab [x(s) | x(T-1-s)] is prebuilt in the wrapper.
    xc = x_ref[...]                                                    # (T*B_pad, 2D)

    valid = jnp.zeros((B_pad, H2), f32)
    hs = None
    for li in range(num_layers):
        w_in_all, whh_all, bi_all, bh_n = [r[...] for r in layer_refs[li]]

        if li > 0:
            # hs[s] = [fwd(s) | bwd(T-1-s)]; combined input = [fwd(s)|bwd(T-1-s)|fwd(T-1-s)|bwd(s)]
            # (the packed input weights were row-permuted at trace time to match this layout).
            in_steps = [jnp.concatenate([hs[s], hs[T - 1 - s]], axis=-1) for s in range(T)]
            xc = jnp.concatenate(in_steps, axis=0)                     # (T*B_pad, 4H)

        # Hoisted input projection for ALL gates: one big matmul per layer, off the chain.
        gi_all = jnp.dot(xc, w_in_all, preferred_element_type=f32) + bi_all   # (T*B_pad, 6H)

        # Hoist the bh_n broadcast out of the unrolled loop (no CSE of broadcast_in_dim).
        bh_n_b = jnp.broadcast_to(bh_n, (B_pad, H2))

        last = li == num_layers - 1
        h = jnp.zeros((B_pad, H2), f32)
        hs = None if last else []
        for s in range(T):
            lo = s * B_pad                                             # static, sublane-aligned
            # One MXU push per step for all 3 gates: (B_pad, 2H) @ (2H, 6H).
            gh = jnp.dot(h, whh_all, preferred_element_type=f32)
            # r|z = 128 lanes exactly -> one sigmoid pass; r at lane 0 is a free slice,
            # z's lane-rotate overlaps the tanh chain below.
            rz = jax.nn.sigmoid(gi_all[lo:lo + B_pad, :H4] + gh[:, :H4])
            r = rz[:, :H2]
            z = rz[:, H2:]
            n = jnp.tanh(gi_all[lo:lo + B_pad, H4:] + r * (gh[:, H4:] + bh_n_b))
            h_cand = n + z * (h - n)                                   # == (1-z)*n + z*h
            h = jnp.where(mask_steps[s], h_cand, h)                    # freeze state past len[b]
            if last:
                valid = jnp.where(sel_steps[s], h, valid)              # last-valid accumulate
            else:
                hs.append(h)
        # TODO(synk): inter-layer GRU dropout and head nn.Dropout are training-only (eval -> id).
        # NOTE: padded time positions of intermediate activations are never read by an active
        # step of the next layer, so they are not explicitly zeroed.

    # --- fused MLP heads (+ sigmoid) ------------------------------------------------------
    if num_mlp_layers == 1:
        w, b = head_refs[0][...], head_refs[1][...]
        out = jnp.dot(valid, w, preferred_element_type=jnp.float32) + b
    else:
        w1, b1, w2, b2 = [r[...] for r in head_refs]
        hid = jnp.maximum(jnp.dot(valid, w1, preferred_element_type=jnp.float32) + b1, 0.0)
        out = jnp.dot(hid, w2, preferred_element_type=jnp.float32) + b2
    out_ref[...] = jax.nn.sigmoid(out)


# ----------------------------------------------------------------------------
# Trace-time weight packing into the fused combined-stream / fused-gate layout
# ----------------------------------------------------------------------------
def _pack_gru_params(params, hidden_size):
    """Per layer: w_in_all (d_in_c, 6H), whh_all (2H, 6H), bi_all (1, 6H), bh_n (1, 2H).
    Gate order [r, z, n]; each gate's 2H block is block-diag over [fwd | bwd] lanes
    (row-permuted for layers > 0 to match the combined-stream input layout)."""
    H = hidden_size
    flat = []
    for li, layer in enumerate(params["layers"]):
        f, b = layer["fwd"], layer["bwd"]
        w_in_g, whh_g, bi_g = [], [], []
        for g in range(3):                                  # gate order [r, z, n]
            sl = slice(g * H, (g + 1) * H)
            wf, wb = f["w_ih"][:, sl], b["w_ih"][:, sl]
            if li == 0:
                # combined-stream input at layer 0 is [x(s) | x(T-1-s)]
                w_in_g.append(jax.scipy.linalg.block_diag(wf, wb))           # (2D, 2H)
            else:
                zeros = jnp.zeros((H, H), wf.dtype)
                # combined-stream input at layer l>0 is
                #   [fwd(s) | bwd(T-1-s) | fwd(T-1-s) | bwd(s)]
                w_in_g.append(jnp.concatenate([
                    jnp.concatenate([wf[:H], zeros], axis=1),   # fwd(s)      -> fwd cols
                    jnp.concatenate([zeros, wb[H:]], axis=1),   # bwd(T-1-s)  -> bwd cols
                    jnp.concatenate([zeros, wb[:H]], axis=1),   # fwd(T-1-s)  -> bwd cols
                    jnp.concatenate([wf[H:], zeros], axis=1),   # bwd(s)      -> fwd cols
                ], axis=0))                                                   # (4H, 2H)
            whh_g.append(jax.scipy.linalg.block_diag(f["w_hh"][:, sl], b["w_hh"][:, sl]))
            if g < 2:   # r, z: fold b_hh into the hoisted input bias
                bi_g.append(jnp.concatenate(
                    [f["b_ih"][:, sl] + f["b_hh"][:, sl],
                     b["b_ih"][:, sl] + b["b_hh"][:, sl]], axis=1))           # (1, 2H)
            else:       # n: b_hh_n must stay with the recurrent term (multiplied by r)
                bi_g.append(jnp.concatenate([f["b_ih"][:, sl], b["b_ih"][:, sl]], axis=1))
        sl_n = slice(2 * H, 3 * H)
        bh_n = jnp.concatenate([f["b_hh"][:, sl_n], b["b_hh"][:, sl_n]], axis=1)  # (1, 2H)
        flat.extend([
            jnp.concatenate(w_in_g, axis=1),                 # (d_in_c, 6H)
            jnp.concatenate(whh_g, axis=1),                  # (2H, 6H)
            jnp.concatenate(bi_g, axis=1),                   # (1, 6H)
            bh_n,                                            # (1, 2H)
        ])
    return flat


# ----------------------------------------------------------------------------
# Forward wrapper: one pallas_call for the whole module
# ----------------------------------------------------------------------------
@functools.partial(jax.jit, static_argnums=(3,))
def custom_rnn_forward(params, x, lengths, num_mlp_layers):
    """x: (B, T, input_size) batch-first (like the PyTorch module); lengths: (B,) ints >= 1."""
    B, T, input_size = x.shape
    H = params["layers"][0]["fwd"]["w_hh"].shape[0]
    num_layers = len(params["layers"])
    B_pad = max(8, ((B + 7) // 8) * 8)                    # sublane-align per-step row blocks

    # Layer-0 combined-stream slab built with plain XLA (layout plumbing outside the kernel):
    # per step s the row block is [x(s) | x(T-1-s)], padded to 8 sublanes, flattened.
    x_tm = jnp.transpose(x, (1, 0, 2)).astype(jnp.float32)            # (T, B, D) time-major
    x_comb = jnp.concatenate([x_tm, x_tm[::-1]], axis=-1)             # (T, B, 2D)
    x_comb = jnp.pad(x_comb, ((0, 0), (0, B_pad - B), (0, 0)))        # (T, B_pad, 2D)
    x_slab = x_comb.reshape(T * B_pad, 2 * input_size)

    # Padding rows get length 0 -> never active, never selected (stay zero).
    len_col = jnp.zeros((B_pad, 1), jnp.int32).at[:B, 0].set(lengths.astype(jnp.int32))

    gru_args = _pack_gru_params(params, H)
    head = params["head"]
    if num_mlp_layers == 1:
        head_args = [head["w"], head["b"]]
    else:
        head_args = [head["w1"], head["b1"], head["w2"], head["b2"]]

    inputs = [x_slab, len_col] + gru_args + head_args
    kernel = functools.partial(fused_rnn_kernel, T=T, B_pad=B_pad, H=H,
                               num_layers=num_layers, num_mlp_layers=num_mlp_layers)
    out = pl.pallas_call(
        kernel,
        out_shape=jax.ShapeDtypeStruct((B_pad, 3), jnp.float32),
        in_specs=[pl.BlockSpec(memory_space=pltpu.MemorySpace.VMEM)] * len(inputs),
        out_specs=pl.BlockSpec(memory_space=pltpu.MemorySpace.VMEM),
    )(*inputs)
    return out[:B]


# ----------------------------------------------------------------------------
# Deterministic parameter initialization (shapes match torch.nn.GRU / nn.Linear)
# ----------------------------------------------------------------------------
def init_params(key, input_size, hidden_size, num_rnn_layers, num_mlp_layers):
    H = hidden_size
    k = key
    params = {"layers": []}
    for layer_idx in range(num_rnn_layers):
        d_in = input_size if layer_idx == 0 else 2 * H
        layer = {}
        for dname in ("fwd", "bwd"):
            k, k1, k2, k3, k4 = jax.random.split(k, 5)
            layer[dname] = dict(
                w_ih=jax.random.normal(k1, (d_in, 3 * H), jnp.float32) * 0.1,
                w_hh=jax.random.normal(k2, (H, 3 * H), jnp.float32) * 0.1,
                b_ih=jax.random.normal(k3, (1, 3 * H), jnp.float32) * 0.1,
                b_hh=jax.random.normal(k4, (1, 3 * H), jnp.float32) * 0.1,
            )
        params["layers"].append(layer)

    if num_mlp_layers == 1:
        k, k1, k2 = jax.random.split(k, 3)
        params["head"] = dict(
            w=jax.random.normal(k1, (2 * H, 3), jnp.float32) * 0.1,   # 3 heads of Linear(2H, 1)
            b=jax.random.normal(k2, (1, 3), jnp.float32) * 0.1,
        )
    else:
        w1s, b1s, w2s, b2s = [], [], [], []
        for _ in range(3):  # activation, dominance, valence heads
            k, k1, k2, k3, k4 = jax.random.split(k, 5)
            w1s.append(jax.random.normal(k1, (2 * H, H), jnp.float32) * 0.1)
            b1s.append(jax.random.normal(k2, (H,), jnp.float32) * 0.1)
            w2s.append(jax.random.normal(k3, (H, 1), jnp.float32) * 0.1)
            b2s.append(jax.random.normal(k4, (1,), jnp.float32) * 0.1)
        params["head"] = dict(
            w1=jnp.concatenate(w1s, axis=1),                    # (2H, 3H)
            b1=jnp.concatenate(b1s)[None, :],                   # (1, 3H)
            w2=jax.scipy.linalg.block_diag(*w2s),               # (3H, 3) keeps heads independent
            b2=jnp.concatenate(b2s)[None, :],                   # (1, 3)
        )
    return params


# ----------------------------------------------------------------------------
# Pure-JAX reference (same math, lax.scan) for a consistency check
# ----------------------------------------------------------------------------
def _gru_dir_ref(x_tm, mask, w_ih, w_hh, b_ih, b_hh, reverse):
    B = x_tm.shape[1]
    H = w_hh.shape[0]

    def cell(h_prev, inp):
        x_t, m = inp
        gi = x_t @ w_ih + b_ih
        gh = h_prev @ w_hh + b_hh
        r = jax.nn.sigmoid(gi[:, :H] + gh[:, :H])
        z = jax.nn.sigmoid(gi[:, H:2 * H] + gh[:, H:2 * H])
        n = jnp.tanh(gi[:, 2 * H:] + r * gh[:, 2 * H:])
        h_new = (1.0 - z) * n + z * h_prev
        h_upd = m * h_new + (1.0 - m) * h_prev
        return h_upd, m * h_upd

    _, ys = lax.scan(cell, jnp.zeros((B, H), jnp.float32), (x_tm, mask), reverse=reverse)
    return ys


def reference_forward(params, x, lengths, num_mlp_layers):
    B, T, _ = x.shape
    x_tm = jnp.transpose(x, (1, 0, 2)).astype(jnp.float32)
    mask = (jnp.arange(T)[:, None] < lengths[None, :]).astype(jnp.float32)[:, :, None]
    h = x_tm
    for layer in params["layers"]:
        f = _gru_dir_ref(h, mask, layer["fwd"]["w_ih"], layer["fwd"]["w_hh"],
                         layer["fwd"]["b_ih"], layer["fwd"]["b_hh"], False)
        b = _gru_dir_ref(h, mask, layer["bwd"]["w_ih"], layer["bwd"]["w_hh"],
                         layer["bwd"]["b_ih"], layer["bwd"]["b_hh"], True)
        h = jnp.concatenate([f, b], axis=-1)
    valid = jnp.transpose(h, (1, 0, 2))[jnp.arange(B), lengths - 1]
    head = params["head"]
    if num_mlp_layers == 1:
        return jax.nn.sigmoid(valid @ head["w"] + head["b"])
    hid = jnp.maximum(valid @ head["w1"] + head["b1"], 0.0)
    return jax.nn.sigmoid(hid @ head["w2"] + head["b2"])


# ----------------------------------------------------------------------------
if __name__ == "__main__":
    input_size = 16
    hidden_size = 32
    num_rnn_layers = 2
    # note: the PyTorch module's `output_size` arg is unused in its forward (heads emit 1 each).
    B, T = 2, 8

    key = jax.random.PRNGKey(0)
    kx, kp = jax.random.split(key)
    x = jax.random.normal(kx, (B, T, input_size), jnp.float32)
    lengths = jnp.array([8, 5], dtype=jnp.int32)   # must be >= 1 (packed-sequence constraint)

    for num_mlp_layers in (2, 1):                  # module allows 1 or 2; both supported
        params = init_params(kp, input_size, hidden_size, num_rnn_layers, num_mlp_layers)
        out = custom_rnn_forward(params, x, lengths, num_mlp_layers)
        out = jax.block_until_ready(out)
        assert out.shape == (B, 3), out.shape
        ref = reference_forward(params, x, lengths, num_mlp_layers)
        # Tightened tolerance (was 1e-2) so layout/packing changes can't silently regress.
        assert bool(jnp.allclose(out, ref, atol=5e-5, rtol=1e-5)), (num_mlp_layers, out, ref)

    print("KERNEL_OK")
</pallas_src>

<mosaic_0001>
module attributes {stable_mosaic.version = 11 : i64} {
  func.func @fused_rnn_kernel(%arg0: memref<64x32xf32, #tpu.memory_space<vmem>>, %arg1: memref<8x1xi32, #tpu.memory_space<vmem>>, %arg2: memref<32x192xf32, #tpu.memory_space<vmem>>, %arg3: memref<64x192xf32, #tpu.memory_space<vmem>>, %arg4: memref<1x192xf32, #tpu.memory_space<vmem>>, %arg5: memref<1x64xf32, #tpu.memory_space<vmem>>, %arg6: memref<128x192xf32, #tpu.memory_space<vmem>>, %arg7: memref<64x192xf32, #tpu.memory_space<vmem>>, %arg8: memref<1x192xf32, #tpu.memory_space<vmem>>, %arg9: memref<1x64xf32, #tpu.memory_space<vmem>>, %arg10: memref<64x96xf32, #tpu.memory_space<vmem>>, %arg11: memref<1x96xf32, #tpu.memory_space<vmem>>, %arg12: memref<96x3xf32, #tpu.memory_space<vmem>>, %arg13: memref<1x3xf32, #tpu.memory_space<vmem>>, %arg14: memref<8x3xf32, #tpu.memory_space<vmem>>) attributes {dimension_semantics = [], scalar_prefetch = 0 : i64, scratch_operands = 0 : i64, tpu.core_type = #tpu.core_type<tc>} {
    %c0 = arith.constant 0 : index
    %c0_0 = arith.constant 0 : index
    %0 = vector.load %arg1[%c0, %c0_0] : memref<8x1xi32, #tpu.memory_space<vmem>>, vector<8x1xi32>
    %1 = vector.shape_cast %0 : vector<8x1xi32> to vector<8x1xi32>
    %2 = vector.broadcast %1 : vector<8x1xi32> to vector<8x64xi32>
    %3 = tpu.iota {dimensions = array<i32: 1>} : vector<8x64xi32>
    %c32_i32 = arith.constant 32 : i32
    %4 = vector.broadcast %c32_i32 : i32 to vector<8x64xi32>
    %5 = arith.cmpi slt, %3, %4 : vector<8x64xi32>
    %c0_i32 = arith.constant 0 : i32
    %c7_i32 = arith.constant 7 : i32
    %6 = vector.broadcast %c0_i32 : i32 to vector<8x64xi32>
    %7 = vector.broadcast %c7_i32 : i32 to vector<8x64xi32>
    %8 = arith.select %5, %6, %7 : vector<8x64xi1>, vector<8x64xi32>
    %9 = arith.cmpi slt, %8, %2 : vector<8x64xi32>
    %c1_i32 = arith.constant 1 : i32
    %10 = vector.broadcast %c1_i32 : i32 to vector<8x64xi32>
    %11 = arith.subi %2, %10 : vector<8x64xi32>
    %12 = arith.cmpi eq, %8, %11 : vector<8x64xi32>
    %c1_i32_1 = arith.constant 1 : i32
    %c6_i32 = arith.constant 6 : i32
    %13 = vector.broadcast %c1_i32_1 : i32 to vector<8x64xi32>
    %14 = vector.broadcast %c6_i32 : i32 to vector<8x64xi32>
    %15 = arith.select %5, %13, %14 : vector<8x64xi1>, vector<8x64xi32>
    %16 = arith.cmpi slt, %15, %2 : vector<8x64xi32>
    %c1_i32_2 = arith.constant 1 : i32
    %17 = vector.broadcast %c1_i32_2 : i32 to vector<8x64xi32>
    %18 = arith.subi %2, %17 : vector<8x64xi32>
    %19 = arith.cmpi eq, %15, %18 : vector<8x64xi32>
    %c2_i32 = arith.constant 2 : i32
    %c5_i32 = arith.constant 5 : i32
    %20 = vector.broadcast %c2_i32 : i32 to vector<8x64xi32>
    %21 = vector.broadcast %c5_i32 : i32 to vector<8x64xi32>
    %22 = arith.select %5, %20, %21 : vector<8x64xi1>, vector<8x64xi32>
    %23 = arith.cmpi slt, %22, %2 : vector<8x64xi32>
    %c1_i32_3 = arith.constant 1 : i32
    %24 = vector.broadcast %c1_i32_3 : i32 to vector<8x64xi32>
    %25 = arith.subi %2, %24 : vector<8x64xi32>
    %26 = arith.cmpi eq, %22, %25 : vector<8x64xi32>
    %c3_i32 = arith.constant 3 : i32
    %c4_i32 = arith.constant 4 : i32
    %27 = vector.broadcast %c3_i32 : i32 to vector<8x64xi32>
    %28 = vector.broadcast %c4_i32 : i32 to vector<8x64xi32>
    %29 = arith.select %5, %27, %28 : vector<8x64xi1>, vector<8x64xi32>
    %30 = arith.cmpi slt, %29, %2 : vector<8x64xi32>
    %c1_i32_4 = arith.constant 1 : i32
    %31 = vector.broadcast %c1_i32_4 : i32 to vector<8x64xi32>
    %32 = arith.subi %2, %31 : vector<8x64xi32>
    %33 = arith.cmpi eq, %29, %32 : vector<8x64xi32>
    %c4_i32_5 = arith.constant 4 : i32
    %c3_i32_6 = arith.constant 3 : i32
    %34 = vector.broadcast %c4_i32_5 : i32 to vector<8x64xi32>
    %35 = vector.broadcast %c3_i32_6 : i32 to vector<8x64xi32>
    %36 = arith.select %5, %34, %35 : vector<8x64xi1>, vector<8x64xi32>
    %37 = arith.cmpi slt, %36, %2 : vector<8x64xi32>
    %c1_i32_7 = arith.constant 1 : i32
    %38 = vector.broadcast %c1_i32_7 : i32 to vector<8x64xi32>
    %39 = arith.subi %2, %38 : vector<8x64xi32>
    %40 = arith.cmpi eq, %36, %39 : vector<8x64xi32>
    %c5_i32_8 = arith.constant 5 : i32
    %c2_i32_9 = arith.constant 2 : i32
    %41 = vector.broadcast %c5_i32_8 : i32 to vector<8x64xi32>
    %42 = vector.broadcast %c2_i32_9 : i32 to vector<8x64xi32>
    %43 = arith.select %5, %41, %42 : vector<8x64xi1>, vector<8x64xi32>
    %44 = arith.cmpi slt, %43, %2 : vector<8x64xi32>
    %c1_i32_10 = arith.constant 1 : i32
    %45 = vector.broadcast %c1_i32_10 : i32 to vector<8x64xi32>
    %46 = arith.subi %2, %45 : vector<8x64xi32>
    %47 = arith.cmpi eq, %43, %46 : vector<8x64xi32>
    %c6_i32_11 = arith.constant 6 : i32
    %c1_i32_12 = arith.constant 1 : i32
    %48 = vector.broadcast %c6_i32_11 : i32 to vector<8x64xi32>
    %49 = vector.broadcast %c1_i32_12 : i32 to vector<8x64xi32>
    %50 = arith.select %5, %48, %49 : vector<8x64xi1>, vector<8x64xi32>
    %51 = arith.cmpi slt, %50, %2 : vector<8x64xi32>
    %c1_i32_13 = arith.constant 1 : i32
    %52 = vector.broadcast %c1_i32_13 : i32 to vector<8x64xi32>
    %53 = arith.subi %2, %52 : vector<8x64xi32>
    %54 = arith.cmpi eq, %50, %53 : vector<8x64xi32>
    %c7_i32_14 = arith.constant 7 : i32
    %c0_i32_15 = arith.constant 0 : i32
    %55 = vector.broadcast %c7_i32_14 : i32 to vector<8x64xi32>
    %56 = vector.broadcast %c0_i32_15 : i32 to vector<8x64xi32>
    %57 = arith.select %5, %55, %56 : vector<8x64xi1>, vector<8x64xi32>
    %58 = arith.cmpi slt, %57, %2 : vector<8x64xi32>
    %c1_i32_16 = arith.constant 1 : i32
    %59 = vector.broadcast %c1_i32_16 : i32 to vector<8x64xi32>
    %60 = arith.subi %2, %59 : vector<8x64xi32>
    %61 = arith.cmpi eq, %57, %60 : vector<8x64xi32>
    %c0_17 = arith.constant 0 : index
    %c0_18 = arith.constant 0 : index
    %62 = vector.load %arg0[%c0_17, %c0_18] : memref<64x32xf32, #tpu.memory_space<vmem>>, vector<64x32xf32>
    %cst = arith.constant 0.000000e+00 : f32
    %63 = vector.broadcast %cst : f32 to vector<8x64xf32>
    %c0_19 = arith.constant 0 : index
    %c0_20 = arith.constant 0 : index
    %64 = vector.load %arg2[%c0_19, %c0_20] : memref<32x192xf32, #tpu.memory_space<vmem>>, vector<32x192xf32>
    %c0_21 = arith.constant 0 : index
    %c0_22 = arith.constant 0 : index
    %65 = vector.load %arg3[%c0_21, %c0_22] : memref<64x192xf32, #tpu.memory_space<vmem>>, vector<64x192xf32>
    %c0_23 = arith.constant 0 : index
    %c0_24 = arith.constant 0 : index
    %66 = vector.load %arg4[%c0_23, %c0_24] : memref<1x192xf32, #tpu.memory_space<vmem>>, vector<1x192xf32>
    %c0_25 = arith.constant 0 : index
    %c0_26 = arith.constant 0 : index
    %67 = vector.load %arg5[%c0_25, %c0_26] : memref<1x64xf32, #tpu.memory_space<vmem>>, vector<1x64xf32>
    %cst_27 = arith.constant dense<0.000000e+00> : vector<64x192xf32>
    %68 = tpu.matmul %62, %64, %cst_27 {dimension_numbers = #tpu.dot_dimension_numbers<[1], [0], [0], [1], [0, 0, 1, 1], [], []>} : vector<64x32xf32>, vector<32x192xf32>, vector<64x192xf32> -> vector<64x192xf32>
    %69 = vector.broadcast %66 : vector<1x192xf32> to vector<64x192xf32>
    %70 = arith.addf %68, %69 : vector<64x192xf32>
    %71 = vector.shape_cast %67 : vector<1x64xf32> to vector<1x64xf32>
    %72 = vector.broadcast %71 : vector<1x64xf32> to vector<8x64xf32>
    %cst_28 = arith.constant 0.000000e+00 : f32
    %73 = vector.broadcast %cst_28 : f32 to vector<8x64xf32>
    %cst_29 = arith.constant dense<0.000000e+00> : vector<8x192xf32>
    %74 = tpu.matmul %73, %65, %cst_29 {dimension_numbers = #tpu.dot_dimension_numbers<[1], [0], [0], [1], [0, 0, 1, 1], [], []>} : vector<8x64xf32>, vector<64x192xf32>, vector<8x192xf32> -> vector<8x192xf32>
    %75 = vector.extract_strided_slice %70 {offsets = [0, 0], sizes = [8, 128], strides = [1, 1]} : vector<64x192xf32> to vector<8x128xf32>
    %76 = vector.extract_strided_slice %74 {offsets = [0, 0], sizes = [8, 128], strides = [1, 1]} : vector<8x192xf32> to vector<8x128xf32>
    %77 = arith.addf %75, %76 : vector<8x128xf32>
    %78 = arith.negf %77 : vector<8x128xf32>
    %79 = math.exp %78 : vector<8x128xf32>
    %cst_30 = arith.constant 1.000000e+00 : f32
    %80 = vector.broadcast %cst_30 : f32 to vector<8x128xf32>
    %81 = arith.addf %80, %79 : vector<8x128xf32>
    %82 = arith.divf %80, %81 : vector<8x128xf32>
    %83 = vector.extract_strided_slice %82 {offsets = [0, 0], sizes = [8, 64], strides = [1, 1]} : vector<8x128xf32> to vector<8x64xf32>
    %84 = vector.extract_strided_slice %82 {offsets = [0, 64], sizes = [8, 64], strides = [1, 1]} : vector<8x128xf32> to vector<8x64xf32>
    %85 = vector.extract_strided_slice %70 {offsets = [0, 128], sizes = [8, 64], strides = [1, 1]} : vector<64x192xf32> to vector<8x64xf32>
    %86 = vector.extract_strided_slice %74 {offsets = [0, 128], sizes = [8, 64], strides = [1, 1]} : vector<8x192xf32> to vector<8x64xf32>
    %87 = arith.addf %86, %72 : vector<8x64xf32>
    %88 = arith.mulf %83, %87 : vector<8x64xf32>
    %89 = arith.addf %85, %88 : vector<8x64xf32>
    %90 = math.tanh %89 : vector<8x64xf32>
    %91 = arith.subf %73, %90 : vector<8x64xf32>
    %92 = arith.mulf %84, %91 : vector<8x64xf32>
    %93 = arith.addf %90, %92 : vector<8x64xf32>
    %94 = arith.select %9, %93, %73 : vector<8x64xi1>, vector<8x64xf32>
    %cst_31 = arith.constant dense<0.000000e+00> : vector<8x192xf32>
    %95 = tpu.matmul %94, %65, %cst_31 {dimension_numbers = #tpu.dot_dimension_numbers<[1], [0], [0], [1], [0, 0, 1, 1], [], []>} : vector<8x64xf32>, vector<64x192xf32>, vector<8x192xf32> -> vector<8x192xf32>
    %96 = vector.extract_strided_slice %70 {offsets = [8, 0], sizes = [8, 128], strides = [1, 1]} : vector<64x192xf32> to vector<8x128xf32>
    %97 = vector.extract_strided_slice %95 {offsets = [0, 0], sizes = [8, 128], strides = [1, 1]} : vector<8x192xf32> to vector<8x128xf32>
    %98 = arith.addf %96, %97 : vector<8x128xf32>
    %99 = arith.negf %98 : vector<8x128xf32>
    %100 = math.exp %99 : vector<8x128xf32>
    %cst_32 = arith.constant 1.000000e+00 : f32
    %101 = vector.broadcast %cst_32 : f32 to vector<8x128xf32>
    %102 = arith.addf %101, %100 : vector<8x128xf32>
    %103 = arith.divf %101, %102 : vector<8x128xf32>
    %104 = vector.extract_strided_slice %103 {offsets = [0, 0], sizes = [8, 64], strides = [1, 1]} : vector<8x128xf32> to vector<8x64xf32>
    %105 = vector.extract_strided_slice %103 {offsets = [0, 64], sizes = [8, 64], strides = [1, 1]} : vector<8x128xf32> to vector<8x64xf32>
    %106 = vector.extract_strided_slice %70 {offsets = [8, 128], sizes = [8, 64], strides = [1, 1]} : vector<64x192xf32> to vector<8x64xf32>
    %107 = vector.extract_strided_slice %95 {offsets = [0, 128], sizes = [8, 64], strides = [1, 1]} : vector<8x192xf32> to vector<8x64xf32>
    %108 = arith.addf %107, %72 : vector<8x64xf32>
    %109 = arith.mulf %104, %108 : vector<8x64xf32>
    %110 = arith.addf %106, %109 : vector<8x64xf32>
    %111 = math.tanh %110 : vector<8x64xf32>
    %112 = arith.subf %94, %111 : vector<8x64xf32>
    %113 = arith.mulf %105, %112 : vector<8x64xf32>
    %114 = arith.addf %111, %113 : vector<8x64xf32>
    %115 = arith.select %16, %114, %94 : vector<8x64xi1>, vector<8x64xf32>
    %cst_33 = arith.constant dense<0.000000e+00> : vector<8x192xf32>
    %116 = tpu.matmul %115, %65, %cst_33 {dimension_numbers = #tpu.dot_dimension_numbers<[1], [0], [0], [1], [0, 0, 1, 1], [], []>} : vector<8x64xf32>, vector<64x192xf32>, vector<8x192xf32> -> vector<8x192xf32>
    %117 = vector.extract_strided_slice %70 {offsets = [16, 0], sizes = [8, 128], strides = [1, 1]} : vector<64x192xf32> to vector<8x128xf32>
    %118 = vector.extract_strided_slice %116 {offsets = [0, 0], sizes = [8, 128], strides = [1, 1]} : vector<8x192xf32> to vector<8x128xf32>
    %119 = arith.addf %117, %118 : vector<8x128xf32>
    %120 = arith.negf %119 : vector<8x128xf32>
    %121 = math.exp %120 : vector<8x128xf32>
    %cst_34 = arith.constant 1.000000e+00 : f32
    %122 = vector.broadcast %cst_34 : f32 to vector<8x128xf32>
    %123 = arith.addf %122, %121 : vector<8x128xf32>
    %124 = arith.divf %122, %123 : vector<8x128xf32>
    %125 = vector.extract_strided_slice %124 {offsets = [0, 0], sizes = [8, 64], strides = [1, 1]} : vector<8x128xf32> to vector<8x64xf32>
    %126 = vector.extract_strided_slice %124 {offsets = [0, 64], sizes = [8, 64], strides = [1, 1]} : vector<8x128xf32> to vector<8x64xf32>
    %127 = vector.extract_strided_slice %70 {offsets = [16, 128], sizes = [8, 64], strides = [1, 1]} : vector<64x192xf32> to vector<8x64xf32>
    %128 = vector.extract_strided_slice %116 {offsets = [0, 128], sizes = [8, 64], strides = [1, 1]} : vector<8x192xf32> to vector<8x64xf32>
    %129 = arith.addf %128, %72 : vector<8x64xf32>
    %130 = arith.mulf %125, %129 : vector<8x64xf32>
    %131 = arith.addf %127, %130 : vector<8x64xf32>
    %132 = math.tanh %131 : vector<8x64xf32>
    %133 = arith.subf %115, %132 : vector<8x64xf32>
    %134 = arith.mulf %126, %133 : vector<8x64xf32>
    %135 = arith.addf %132, %134 : vector<8x64xf32>
    %136 = arith.select %23, %135, %115 : vector<8x64xi1>, vector<8x64xf32>
    %cst_35 = arith.constant dense<0.000000e+00> : vector<8x192xf32>
    %137 = tpu.matmul %136, %65, %cst_35 {dimension_numbers = #tpu.dot_dimension_numbers<[1], [0], [0], [1], [0, 0, 1, 1], [], []>} : vector<8x64xf32>, vector<64x192xf32>, vector<8x192xf32> -> vector<8x192xf32>
    %138 = vector.extract_strided_slice %70 {offsets = [24, 0], sizes = [8, 128], strides = [1, 1]} : vector<64x192xf32> to vector<8x128xf32>
    %139 = vector.extract_strided_slice %137 {offsets = [0, 0], sizes = [8, 128], strides = [1, 1]} : vector<8x192xf32> to vector<8x128xf32>
    %140 = arith.addf %138, %139 : vector<8x128xf32>
    %141 = arith.negf %140 : vector<8x128xf32>
    %142 = math.exp %141 : vector<8x128xf32>
    %cst_36 = arith.constant 1.000000e+00 : f32
    %143 = vector.broadcast %cst_36 : f32 to vector<8x128xf32>
    %144 = arith.addf %143, %142 : vector<8x128xf32>
    %145 = arith.divf %143, %144 : vector<8x128xf32>
    %146 = vector.extract_strided_slice %145 {offsets = [0, 0], sizes = [8, 64], strides = [1, 1]} : vector<8x128xf32> to vector<8x64xf32>
    %147 = vector.extract_strided_slice %145 {offsets = [0, 64], sizes = [8, 64], strides = [1, 1]} : vector<8x128xf32> to vector<8x64xf32>
    %148 = vector.extract_strided_slice %70 {offsets = [24, 128], sizes = [8, 64], strides = [1, 1]} : vector<64x192xf32> to vector<8x64xf32>
    %149 = vector.extract_strided_slice %137 {offsets = [0, 128], sizes = [8, 64], strides = [1, 1]} : vector<8x192xf32> to vector<8x64xf32>
    %150 = arith.addf %149, %72 : vector<8x64xf32>
    %151 = arith.mulf %146, %150 : vector<8x64xf32>
    %152 = arith.addf %148, %151 : vector<8x64xf32>
    %153 = math.tanh %152 : vector<8x64xf32>
    %154 = arith.subf %136, %153 : vector<8x64xf32>
    %155 = arith.mulf %147, %154 : vector<8x64xf32>
    %156 = arith.addf %153, %155 : vector<8x64xf32>
    %157 = arith.select %30, %156, %136 : vector<8x64xi1>, vector<8x64xf32>
    %cst_37 = arith.constant dense<0.000000e+00> : vector<8x192xf32>
    %158 = tpu.matmul %157, %65, %cst_37 {dimension_numbers = #tpu.dot_dimension_numbers<[1], [0], [0], [1], [0, 0, 1, 1], [], []>} : vector<8x64xf32>, vector<64x192xf32>, vector<8x192xf32> -> vector<8x192xf32>
    %159 = vector.extract_strided_slice %70 {offsets = [32, 0], sizes = [8, 128], strides = [1, 1]} : vector<64x192xf32> to vector<8x128xf32>
    %160 = vector.extract_strided_slice %158 {offsets = [0, 0], sizes = [8, 128], strides = [1, 1]} : vector<8x192xf32> to vector<8x128xf32>
    %161 = arith.addf %159, %160 : vector<8x128xf32>
    %162 = arith.negf %161 : vector<8x128xf32>
    %163 = math.exp %162 : vector<8x128xf32>
    %cst_38 = arith.constant 1.000000e+00 : f32
    %164 = vector.broadcast %cst_38 : f32 to vector<8x128xf32>
    %165 = arith.addf %164, %163 : vector<8x128xf32>
    %166 = arith.divf %164, %165 : vector<8x128xf32>
    %167 = vector.extract_strided_slice %166 {offsets = [0, 0], sizes = [8, 64], strides = [1, 1]} : vector<8x128xf32> to vector<8x64xf32>
    %168 = vector.extract_strided_slice %166 {offsets = [0, 64], sizes = [8, 64], strides = [1, 1]} : vector<8x128xf32> to vector<8x64xf32>
    %169 = vector.extract_strided_slice %70 {offsets = [32, 128], sizes = [8, 64], strides = [1, 1]} : vector<64x192xf32> to vector<8x64xf32>
    %170 = vector.extract_strided_slice %158 {offsets = [0, 128], sizes = [8, 64], strides = [1, 1]} : vector<8x192xf32> to vector<8x64xf32>
    %171 = arith.addf %170, %72 : vector<8x64xf32>
    %172 = arith.mulf %167, %171 : vector<8x64xf32>
    %173 = arith.addf %169, %172 : vector<8x64xf32>
    %174 = math.tanh %173 : vector<8x64xf32>
    %175 = arith.subf %157, %174 : vector<8x64xf32>
    %176 = arith.mulf %168, %175 : vector<8x64xf32>
    %177 = arith.addf %174, %176 : vector<8x64xf32>
    %178 = arith.select %37, %177, %157 : vector<8x64xi1>, vector<8x64xf32>
    %cst_39 = arith.constant dense<0.000000e+00> : vector<8x192xf32>
    %179 = tpu.matmul %178, %65, %cst_39 {dimension_numbers = #tpu.dot_dimension_numbers<[1], [0], [0], [1], [0, 0, 1, 1], [], []>} : vector<8x64xf32>, vector<64x192xf32>, vector<8x192xf32> -> vector<8x192xf32>
    %180 = vector.extract_strided_slice %70 {offsets = [40, 0], sizes = [8, 128], strides = [1, 1]} : vector<64x192xf32> to vector<8x128xf32>
    %181 = vector.extract_strided_slice %179 {offsets = [0, 0], sizes = [8, 128], strides = [1, 1]} : vector<8x192xf32> to vector<8x128xf32>
    %182 = arith.addf %180, %181 : vector<8x128xf32>
    %183 = arith.negf %182 : vector<8x128xf32>
    %184 = math.exp %183 : vector<8x128xf32>
    %cst_40 = arith.constant 1.000000e+00 : f32
    %185 = vector.broadcast %cst_40 : f32 to vector<8x128xf32>
    %186 = arith.addf %185, %184 : vector<8x128xf32>
    %187 = arith.divf %185, %186 : vector<8x128xf32>
    %188 = vector.extract_strided_slice %187 {offsets = [0, 0], sizes = [8, 64], strides = [1, 1]} : vector<8x128xf32> to vector<8x64xf32>
    %189 = vector.extract_strided_slice %187 {offsets = [0, 64], sizes = [8, 64], strides = [1, 1]} : vector<8x128xf32> to vector<8x64xf32>
    %190 = vector.extract_strided_slice %70 {offsets = [40, 128], sizes = [8, 64], strides = [1, 1]} : vector<64x192xf32> to vector<8x64xf32>
    %191 = vector.extract_strided_slice %179 {offsets = [0, 128], sizes = [8, 64], strides = [1, 1]} : vector<8x192xf32> to vector<8x64xf32>
    %192 = arith.addf %191, %72 : vector<8x64xf32>
    %193 = arith.mulf %188, %192 : vector<8x64xf32>
    %194 = arith.addf %190, %193 : vector<8x64xf32>
    %195 = math.tanh %194 : vector<8x64xf32>
    %196 = arith.subf %178, %195 : vector<8x64xf32>
    %197 = arith.mulf %189, %196 : vector<8x64xf32>
    %198 = arith.addf %195, %197 : vector<8x64xf32>
    %199 = arith.select %44, %198, %178 : vector<8x64xi1>, vector<8x64xf32>
    %cst_41 = arith.constant dense<0.000000e+00> : vector<8x192xf32>
    %200 = tpu.matmul %199, %65, %cst_41 {dimension_numbers = #tpu.dot_dimension_numbers<[1], [0], [0], [1], [0, 0, 1, 1], [], []>} : vector<8x64xf32>, vector<64x192xf32>, vector<8x192xf32> -> vector<8x192xf32>
    %201 = vector.extract_strided_slice %70 {offsets = [48, 0], sizes = [8, 128], strides = [1, 1]} : vector<64x192xf32> to vector<8x128xf32>
    %202 = vector.extract_strided_slice %200 {offsets = [0, 0], sizes = [8, 128], strides = [1, 1]} : vector<8x192xf32> to vector<8x128xf32>
    %203 = arith.addf %201, %202 : vector<8x128xf32>
    %204 = arith.negf %203 : vector<8x128xf32>
    %205 = math.exp %204 : vector<8x128xf32>
    %cst_42 = arith.constant 1.000000e+00 : f32
    %206 = vector.broadcast %cst_42 : f32 to vector<8x128xf32>
    %207 = arith.addf %206, %205 : vector<8x128xf32>
    %208 = arith.divf %206, %207 : vector<8x128xf32>
    %209 = vector.extract_strided_slice %208 {offsets = [0, 0], sizes = [8, 64], strides = [1, 1]} : vector<8x128xf32> to vector<8x64xf32>
    %210 = vector.extract_strided_slice %208 {offsets = [0, 64], sizes = [8, 64], strides = [1, 1]} : vector<8x128xf32> to vector<8x64xf32>
    %211 = vector.extract_strided_slice %70 {offsets = [48, 128], sizes = [8, 64], strides = [1, 1]} : vector<64x192xf32> to vector<8x64xf32>
    %212 = vector.extract_strided_slice %200 {offsets = [0, 128], sizes = [8, 64], strides = [1, 1]} : vector<8x192xf32> to vector<8x64xf32>
    %213 = arith.addf %212, %72 : vector<8x64xf32>
    %214 = arith.mulf %209, %213 : vector<8x64xf32>
    %215 = arith.addf %211, %214 : vector<8x64xf32>
    %216 = math.tanh %215 : vector<8x64xf32>
    %217 = arith.subf %199, %216 : vector<8x64xf32>
    %218 = arith.mulf %210, %217 : vector<8x64xf32>
    %219 = arith.addf %216, %218 : vector<8x64xf32>
    %220 = arith.select %51, %219, %199 : vector<8x64xi1>, vector<8x64xf32>
    %cst_43 = arith.constant dense<0.000000e+00> : vector<8x192xf32>
    %221 = tpu.matmul %220, %65, %cst_43 {dimension_numbers = #tpu.dot_dimension_numbers<[1], [0], [0], [1], [0, 0, 1, 1], [], []>} : vector<8x64xf32>, vector<64x192xf32>, vector<8x192xf32> -> vector<8x192xf32>
    %222 = vector.extract_strided_slice %70 {offsets = [56, 0], sizes = [8, 128], strides = [1, 1]} : vector<64x192xf32> to vector<8x128xf32>
    %223 = vector.extract_strided_slice %221 {offsets = [0, 0], sizes = [8, 128], strides = [1, 1]} : vector<8x192xf32> to vector<8x128xf32>
    %224 = arith.addf %222, %223 : vector<8x128xf32>
    %225 = arith.negf %224 : vector<8x128xf32>
    %226 = math.exp %225 : vector<8x128xf32>
    %cst_44 = arith.constant 1.000000e+00 : f32
    %227 = vector.broadcast %cst_44 : f32 to vector<8x128xf32>
    %228 = arith.addf %227, %226 : vector<8x128xf32>
    %229 = arith.divf %227, %228 : vector<8x128xf32>
    %230 = vector.extract_strided_slice %229 {offsets = [0, 0], sizes = [8, 64], strides = [1, 1]} : vector<8x128xf32> to vector<8x64xf32>
    %231 = vector.extract_strided_slice %229 {offsets = [0, 64], sizes = [8, 64], strides = [1, 1]} : vector<8x128xf32> to vector<8x64xf32>
    %232 = vector.extract_strided_slice %70 {offsets = [56, 128], sizes = [8, 64], strides = [1, 1]} : vector<64x192xf32> to vector<8x64xf32>
    %233 = vector.extract_strided_slice %221 {offsets = [0, 128], sizes = [8, 64], strides = [1, 1]} : vector<8x192xf32> to vector<8x64xf32>
    %234 = arith.addf %233, %72 : vector<8x64xf32>
    %235 = arith.mulf %230, %234 : vector<8x64xf32>
    %236 = arith.addf %232, %235 : vector<8x64xf32>
    %237 = math.tanh %236 : vector<8x64xf32>
    %238 = arith.subf %220, %237 : vector<8x64xf32>
    %239 = arith.mulf %231, %238 : vector<8x64xf32>
    %240 = arith.addf %237, %239 : vector<8x64xf32>
    %241 = arith.select %58, %240, %220 : vector<8x64xi1>, vector<8x64xf32>
    %c0_45 = arith.constant 0 : index
    %c0_46 = arith.constant 0 : index
    %242 = vector.load %arg6[%c0_45, %c0_46] : memref<128x192xf32, #tpu.memory_space<vmem>>, vector<128x192xf32>
    %c0_47 = arith.constant 0 : index
    %c0_48 = arith.constant 0 : index
    %243 = vector.load %arg7[%c0_47, %c0_48] : memref<64x192xf32, #tpu.memory_space<vmem>>, vector<64x192xf32>
    %c0_49 = arith.constant 0 : index
    %c0_50 = arith.constant 0 : index
    %244 = vector.load %arg8[%c0_49, %c0_50] : memref<1x192xf32, #tpu.memory_space<vmem>>, vector<1x192xf32>
    %c0_51 = arith.constant 0 : index
    %c0_52 = arith.constant 0 : index
    %245 = vector.load %arg9[%c0_51, %c0_52] : memref<1x64xf32, #tpu.memory_space<vmem>>, vector<1x64xf32>
    %246 = tpu.concatenate %94, %241 in 1 : vector<8x64xf32>, vector<8x64xf32> -> vector<8x128xf32>
    %247 = tpu.concatenate %115, %220 in 1 : vector<8x64xf32>, vector<8x64xf32> -> vector<8x128xf32>
    %248 = tpu.concatenate %136, %199 in 1 : vector<8x64xf32>, vector<8x64xf32> -> vector<8x128xf32>
    %249 = tpu.concatenate %157, %178 in 1 : vector<8x64xf32>, vector<8x64xf32> -> vector<8x128xf32>
    %250 = tpu.concatenate %178, %157 in 1 : vector<8x64xf32>, vector<8x64xf32> -> vector<8x128xf32>
    %251 = tpu.concatenate %199, %136 in 1 : vector<8x64xf32>, vector<8x64xf32> -> vector<8x128xf32>
    %252 = tpu.concatenate %220, %115 in 1 : vector<8x64xf32>, vector<8x64xf32> -> vector<8x128xf32>
    %253 = tpu.concatenate %241, %94 in 1 : vector<8x64xf32>, vector<8x64xf32> -> vector<8x128xf32>
    %254 = tpu.concatenate %246, %247, %248, %249, %250, %251, %252, %253 in 0 : vector<8x128xf32>, vector<8x128xf32>, vector<8x128xf32>, vector<8x128xf32>, vector<8x128xf32>, vector<8x128xf32>, vector<8x128xf32>, vector<8x128xf32> -> vector<64x128xf32>
    %cst_53 = arith.constant dense<0.000000e+00> : vector<64x192xf32>
    %255 = tpu.matmul %254, %242, %cst_53 {dimension_numbers = #tpu.dot_dimension_numbers<[1], [0], [0], [1], [0, 0, 1, 1], [], []>} : vector<64x128xf32>, vector<128x192xf32>, vector<64x192xf32> -> vector<64x192xf32>
    %256 = vector.broadcast %244 : vector<1x192xf32> to vector<64x192xf32>
    %257 = arith.addf %255, %256 : vector<64x192xf32>
    %258 = vector.shape_cast %245 : vector<1x64xf32> to vector<1x64xf32>
    %259 = vector.broadcast %258 : vector<1x64xf32> to vector<8x64xf32>
    %cst_54 = arith.constant 0.000000e+00 : f32
    %260 = vector.broadcast %cst_54 : f32 to vector<8x64xf32>
    %cst_55 = arith.constant dense<0.000000e+00> : vector<8x192xf32>
    %261 = tpu.matmul %260, %243, %cst_55 {dimension_numbers = #tpu.dot_dimension_numbers<[1], [0], [0], [1], [0, 0, 1, 1], [], []>} : vector<8x64xf32>, vector<64x192xf32>, vector<8x192xf32> -> vector<8x192xf32>
    %262 = vector.extract_strided_slice %257 {offsets = [0, 0], sizes = [8, 128], strides = [1, 1]} : vector<64x192xf32> to vector<8x128xf32>
    %263 = vector.extract_strided_slice %261 {offsets = [0, 0], sizes = [8, 128], strides = [1, 1]} : vector<8x192xf32> to vector<8x128xf32>
    %264 = arith.addf %262, %263 : vector<8x128xf32>
    %265 = arith.negf %264 : vector<8x128xf32>
    %266 = math.exp %265 : vector<8x128xf32>
    %cst_56 = arith.constant 1.000000e+00 : f32
    %267 = vector.broadcast %cst_56 : f32 to vector<8x128xf32>
    %268 = arith.addf %267, %266 : vector<8x128xf32>
    %269 = arith.divf %267, %268 : vector<8x128xf32>
    %270 = vector.extract_strided_slice %269 {offsets = [0, 0], sizes = [8, 64], strides = [1, 1]} : vector<8x128xf32> to vector<8x64xf32>
    %271 = vector.extract_strided_slice %269 {offsets = [0, 64], sizes = [8, 64], strides = [1, 1]} : vector<8x128xf32> to vector<8x64xf32>
    %272 = vector.extract_strided_slice %257 {offsets = [0, 128], sizes = [8, 64], strides = [1, 1]} : vector<64x192xf32> to vector<8x64xf32>
    %273 = vector.extract_strided_slice %261 {offsets = [0, 128], sizes = [8, 64], strides = [1, 1]} : vector<8x192xf32> to vector<8x64xf32>
    %274 = arith.addf %273, %259 : vector<8x64xf32>
    %275 = arith.mulf %270, %274 : vector<8x64xf32>
    %276 = arith.addf %272, %275 : vector<8x64xf32>
    %277 = math.tanh %276 : vector<8x64xf32>
    %278 = arith.subf %260, %277 : vector<8x64xf32>
    %279 = arith.mulf %271, %278 : vector<8x64xf32>
    %280 = arith.addf %277, %279 : vector<8x64xf32>
    %281 = arith.select %9, %280, %260 : vector<8x64xi1>, vector<8x64xf32>
    %282 = arith.select %12, %281, %63 : vector<8x64xi1>, vector<8x64xf32>
    %cst_57 = arith.constant dense<0.000000e+00> : vector<8x192xf32>
    %283 = tpu.matmul %281, %243, %cst_57 {dimension_numbers = #tpu.dot_dimension_numbers<[1], [0], [0], [1], [0, 0, 1, 1], [], []>} : vector<8x64xf32>, vector<64x192xf32>, vector<8x192xf32> -> vector<8x192xf32>
    %284 = vector.extract_strided_slice %257 {offsets = [8, 0], sizes = [8, 128], strides = [1, 1]} : vector<64x192xf32> to vector<8x128xf32>
    %285 = vector.extract_strided_slice %283 {offsets = [0, 0], sizes = [8, 128], strides = [1, 1]} : vector<8x192xf32> to vector<8x128xf32>
    %286 = arith.addf %284, %285 : vector<8x128xf32>
    %287 = arith.negf %286 : vector<8x128xf32>
    %288 = math.exp %287 : vector<8x128xf32>
    %cst_58 = arith.constant 1.000000e+00 : f32
    %289 = vector.broadcast %cst_58 : f32 to vector<8x128xf32>
    %290 = arith.addf %289, %288 : vector<8x128xf32>
    %291 = arith.divf %289, %290 : vector<8x128xf32>
    %292 = vector.extract_strided_slice %291 {offsets = [0, 0], sizes = [8, 64], strides = [1, 1]} : vector<8x128xf32> to vector<8x64xf32>
    %293 = vector.extract_strided_slice %291 {offsets = [0, 64], sizes = [8, 64], strides = [1, 1]} : vector<8x128xf32> to vector<8x64xf32>
    %294 = vector.extract_strided_slice %257 {offsets = [8, 128], sizes = [8, 64], strides = [1, 1]} : vector<64x192xf32> to vector<8x64xf32>
    %295 = vector.extract_strided_slice %283 {offsets = [0, 128], sizes = [8, 64], strides = [1, 1]} : vector<8x192xf32> to vector<8x64xf32>
    %296 = arith.addf %295, %259 : vector<8x64xf32>
    %297 = arith.mulf %292, %296 : vector<8x64xf32>
    %298 = arith.addf %294, %297 : vector<8x64xf32>
    %299 = math.tanh %298 : vector<8x64xf32>
    %300 = arith.subf %281, %299 : vector<8x64xf32>
    %301 = arith.mulf %293, %300 : vector<8x64xf32>
    %302 = arith.addf %299, %301 : vector<8x64xf32>
    %303 = arith.select %16, %302, %281 : vector<8x64xi1>, vector<8x64xf32>
    %304 = arith.select %19, %303, %282 : vector<8x64xi1>, vector<8x64xf32>
    %cst_59 = arith.constant dense<0.000000e+00> : vector<8x192xf32>
    %305 = tpu.matmul %303, %243, %cst_59 {dimension_numbers = #tpu.dot_dimension_numbers<[1], [0], [0], [1], [0, 0, 1, 1], [], []>} : vector<8x64xf32>, vector<64x192xf32>, vector<8x192xf32> -> vector<8x192xf32>
    %306 = vector.extract_strided_slice %257 {offsets = [16, 0], sizes = [8, 128], strides = [1, 1]} : vector<64x192xf32> to vector<8x128xf32>
    %307 = vector.extract_strided_slice %305 {offsets = [0, 0], sizes = [8, 128], strides = [1, 1]} : vector<8x192xf32> to vector<8x128xf32>
    %308 = arith.addf %306, %307 : vector<8x128xf32>
    %309 = arith.negf %308 : vector<8x128xf32>
    %310 = math.exp %309 : vector<8x128xf32>
    %cst_60 = arith.constant 1.000000e+00 : f32
    %311 = vector.broadcast %cst_60 : f32 to vector<8x128xf32>
    %312 = arith.addf %311, %310 : vector<8x128xf32>
    %313 = arith.divf %311, %312 : vector<8x128xf32>
    %314 = vector.extract_strided_slice %313 {offsets = [0, 0], sizes = [8, 64], strides = [1, 1]} : vector<8x128xf32> to vector<8x64xf32>
    %315 = vector.extract_strided_slice %313 {offsets = [0, 64], sizes = [8, 64], strides = [1, 1]} : vector<8x128xf32> to vector<8x64xf32>
    %316 = vector.extract_strided_slice %257 {offsets = [16, 128], sizes = [8, 64], strides = [1, 1]} : vector<64x192xf32> to vector<8x64xf32>
    %317 = vector.extract_strided_slice %305 {offsets = [0, 128], sizes = [8, 64], strides = [1, 1]} : vector<8x192xf32> to vector<8x64xf32>
    %318 = arith.addf %317, %259 : vector<8x64xf32>
    %319 = arith.mulf %314, %318 : vector<8x64xf32>
    %320 = arith.addf %316, %319 : vector<8x64xf32>
    %321 = math.tanh %320 : vector<8x64xf32>
    %322 = arith.subf %303, %321 : vector<8x64xf32>
    %323 = arith.mulf %315, %322 : vector<8x64xf32>
    %324 = arith.addf %321, %323 : vector<8x64xf32>
    %325 = arith.select %23, %324, %303 : vector<8x64xi1>, vector<8x64xf32>
    %326 = arith.select %26, %325, %304 : vector<8x64xi1>, vector<8x64xf32>
    %cst_61 = arith.constant dense<0.000000e+00> : vector<8x192xf32>
    %327 = tpu.matmul %325, %243, %cst_61 {dimension_numbers = #tpu.dot_dimension_numbers<[1], [0], [0], [1], [0, 0, 1, 1], [], []>} : vector<8x64xf32>, vector<64x192xf32>, vector<8x192xf32> -> vector<8x192xf32>
    %328 = vector.extract_strided_slice %257 {offsets = [24, 0], sizes = [8, 128], strides = [1, 1]} : vector<64x192xf32> to vector<8x128xf32>
    %329 = vector.extract_strided_slice %327 {offsets = [0, 0], sizes = [8, 128], strides = [1, 1]} : vector<8x192xf32> to vector<8x128xf32>
    %330 = arith.addf %328, %329 : vector<8x128xf32>
    %331 = arith.negf %330 : vector<8x128xf32>
    %332 = math.exp %331 : vector<8x128xf32>
    %cst_62 = arith.constant 1.000000e+00 : f32
    %333 = vector.broadcast %cst_62 : f32 to vector<8x128xf32>
    %334 = arith.addf %333, %332 : vector<8x128xf32>
    %335 = arith.divf %333, %334 : vector<8x128xf32>
    %336 = vector.extract_strided_slice %335 {offsets = [0, 0], sizes = [8, 64], strides = [1, 1]} : vector<8x128xf32> to vector<8x64xf32>
    %337 = vector.extract_strided_slice %335 {offsets = [0, 64], sizes = [8, 64], strides = [1, 1]} : vector<8x128xf32> to vector<8x64xf32>
    %338 = vector.extract_strided_slice %257 {offsets = [24, 128], sizes = [8, 64], strides = [1, 1]} : vector<64x192xf32> to vector<8x64xf32>
    %339 = vector.extract_strided_slice %327 {offsets = [0, 128], sizes = [8, 64], strides = [1, 1]} : vector<8x192xf32> to vector<8x64xf32>
    %340 = arith.addf %339, %259 : vector<8x64xf32>
    %341 = arith.mulf %336, %340 : vector<8x64xf32>
    %342 = arith.addf %338, %341 : vector<8x64xf32>
    %343 = math.tanh %342 : vector<8x64xf32>
    %344 = arith.subf %325, %343 : vector<8x64xf32>
    %345 = arith.mulf %337, %344 : vector<8x64xf32>
    %346 = arith.addf %343, %345 : vector<8x64xf32>
    %347 = arith.select %30, %346, %325 : vector<8x64xi1>, vector<8x64xf32>
    %348 = arith.select %33, %347, %326 : vector<8x64xi1>, vector<8x64xf32>
    %cst_63 = arith.constant dense<0.000000e+00> : vector<8x192xf32>
    %349 = tpu.matmul %347, %243, %cst_63 {dimension_numbers = #tpu.dot_dimension_numbers<[1], [0], [0], [1], [0, 0, 1, 1], [], []>} : vector<8x64xf32>, vector<64x192xf32>, vector<8x192xf32> -> vector<8x192xf32>
    %350 = vector.extract_strided_slice %257 {offsets = [32, 0], sizes = [8, 128], strides = [1, 1]} : vector<64x192xf32> to vector<8x128xf32>
    %351 = vector.extract_strided_slice %349 {offsets = [0, 0], sizes = [8, 128], strides = [1, 1]} : vector<8x192xf32> to vector<8x128xf32>
    %352 = arith.addf %350, %351 : vector<8x128xf32>
    %353 = arith.negf %352 : vector<8x128xf32>
    %354 = math.exp %353 : vector<8x128xf32>
    %cst_64 = arith.constant 1.000000e+00 : f32
    %355 = vector.broadcast %cst_64 : f32 to vector<8x128xf32>
    %356 = arith.addf %355, %354 : vector<8x128xf32>
    %357 = arith.divf %355, %356 : vector<8x128xf32>
    %358 = vector.extract_strided_slice %357 {offsets = [0, 0], sizes = [8, 64], strides = [1, 1]} : vector<8x128xf32> to vector<8x64xf32>
    %359 = vector.extract_strided_slice %357 {offsets = [0, 64], sizes = [8, 64], strides = [1, 1]} : vector<8x128xf32> to vector<8x64xf32>
    %360 = vector.extract_strided_slice %257 {offsets = [32, 128], sizes = [8, 64], strides = [1, 1]} : vector<64x192xf32> to vector<8x64xf32>
    %361 = vector.extract_strided_slice %349 {offsets = [0, 128], sizes = [8, 64], strides = [1, 1]} : vector<8x192xf32> to vector<8x64xf32>
    %362 = arith.addf %361, %259 : vector<8x64xf32>
    %363 = arith.mulf %358, %362 : vector<8x64xf32>
    %364 = arith.addf %360, %363 : vector<8x64xf32>
    %365 = math.tanh %364 : vector<8x64xf32>
    %366 = arith.subf %347, %365 : vector<8x64xf32>
    %367 = arith.mulf %359, %366 : vector<8x64xf32>
    %368 = arith.addf %365, %367 : vector<8x64xf32>
    %369 = arith.select %37, %368, %347 : vector<8x64xi1>, vector<8x64xf32>
    %370 = arith.select %40, %369, %348 : vector<8x64xi1>, vector<8x64xf32>
    %cst_65 = arith.constant dense<0.000000e+00> : vector<8x192xf32>
    %371 = tpu.matmul %369, %243, %cst_65 {dimension_numbers = #tpu.dot_dimension_numbers<[1], [0], [0], [1], [0, 0, 1, 1], [], []>} : vector<8x64xf32>, vector<64x192xf32>, vector<8x192xf32> -> vector<8x192xf32>
    %372 = vector.extract_strided_slice %257 {offsets = [40, 0], sizes = [8, 128], strides = [1, 1]} : vector<64x192xf32> to vector<8x128xf32>
    %373 = vector.extract_strided_slice %371 {offsets = [0, 0], sizes = [8, 128], strides = [1, 1]} : vector<8x192xf32> to vector<8x128xf32>
    %374 = arith.addf %372, %373 : vector<8x128xf32>
    %375 = arith.negf %374 : vector<8x128xf32>
    %376 = math.exp %375 : vector<8x128xf32>
    %cst_66 = arith.constant 1.000000e+00 : f32
    %377 = vector.broadcast %cst_66 : f32 to vector<8x128xf32>
    %378 = arith.addf %377, %376 : vector<8x128xf32>
    %379 = arith.divf %377, %378 : vector<8x128xf32>
    %380 = vector.extract_strided_slice %379 {offsets = [0, 0], sizes = [8, 64], strides = [1, 1]} : vector<8x128xf32> to vector<8x64xf32>
    %381 = vector.extract_strided_slice %379 {offsets = [0, 64], sizes = [8, 64], strides = [1, 1]} : vector<8x128xf32> to vector<8x64xf32>
    %382 = vector.extract_strided_slice %257 {offsets = [40, 128], sizes = [8, 64], strides = [1, 1]} : vector<64x192xf32> to vector<8x64xf32>
    %383 = vector.extract_strided_slice %371 {offsets = [0, 128], sizes = [8, 64], strides = [1, 1]} : vector<8x192xf32> to vector<8x64xf32>
    %384 = arith.addf %383, %259 : vector<8x64xf32>
    %385 = arith.mulf %380, %384 : vector<8x64xf32>
    %386 = arith.addf %382, %385 : vector<8x64xf32>
    %387 = math.tanh %386 : vector<8x64xf32>
    %388 = arith.subf %369, %387 : vector<8x64xf32>
    %389 = arith.mulf %381, %388 : vector<8x64xf32>
    %390 = arith.addf %387, %389 : vector<8x64xf32>
    %391 = arith.select %44, %390, %369 : vector<8x64xi1>, vector<8x64xf32>
    %392 = arith.select %47, %391, %370 : vector<8x64xi1>, vector<8x64xf32>
    %cst_67 = arith.constant dense<0.000000e+00> : vector<8x192xf32>
    %393 = tpu.matmul %391, %243, %cst_67 {dimension_numbers = #tpu.dot_dimension_numbers<[1], [0], [0], [1], [0, 0, 1, 1], [], []>} : vector<8x64xf32>, vector<64x192xf32>, vector<8x192xf32> -> vector<8x192xf32>
    %394 = vector.extract_strided_slice %257 {offsets = [48, 0], sizes = [8, 128], strides = [1, 1]} : vector<64x192xf32> to vector<8x128xf32>
    %395 = vector.extract_strided_slice %393 {offsets = [0, 0], sizes = [8, 128], strides = [1, 1]} : vector<8x192xf32> to vector<8x128xf32>
    %396 = arith.addf %394, %395 : vector<8x128xf32>
    %397 = arith.negf %396 : vector<8x128xf32>
    %398 = math.exp %397 : vector<8x128xf32>
    %cst_68 = arith.constant 1.000000e+00 : f32
    %399 = vector.broadcast %cst_68 : f32 to vector<8x128xf32>
    %400 = arith.addf %399, %398 : vector<8x128xf32>
    %401 = arith.divf %399, %400 : vector<8x128xf32>
    %402 = vector.extract_strided_slice %401 {offsets = [0, 0], sizes = [8, 64], strides = [1, 1]} : vector<8x128xf32> to vector<8x64xf32>
    %403 = vector.extract_strided_slice %401 {offsets = [0, 64], sizes = [8, 64], strides = [1, 1]} : vector<8x128xf32> to vector<8x64xf32>
    %404 = vector.extract_strided_slice %257 {offsets = [48, 128], sizes = [8, 64], strides = [1, 1]} : vector<64x192xf32> to vector<8x64xf32>
    %405 = vector.extract_strided_slice %393 {offsets = [0, 128], sizes = [8, 64], strides = [1, 1]} : vector<8x192xf32> to vector<8x64xf32>
    %406 = arith.addf %405, %259 : vector<8x64xf32>
    %407 = arith.mulf %402, %406 : vector<8x64xf32>
    %408 = arith.addf %404, %407 : vector<8x64xf32>
    %409 = math.tanh %408 : vector<8x64xf32>
    %410 = arith.subf %391, %409 : vector<8x64xf32>
    %411 = arith.mulf %403, %410 : vector<8x64xf32>
    %412 = arith.addf %409, %411 : vector<8x64xf32>
    %413 = arith.select %51, %412, %391 : vector<8x64xi1>, vector<8x64xf32>
    %414 = arith.select %54, %413, %392 : vector<8x64xi1>, vector<8x64xf32>
    %cst_69 = arith.constant dense<0.000000e+00> : vector<8x192xf32>
    %415 = tpu.matmul %413, %243, %cst_69 {dimension_numbers = #tpu.dot_dimension_numbers<[1], [0], [0], [1], [0, 0, 1, 1], [], []>} : vector<8x64xf32>, vector<64x192xf32>, vector<8x192xf32> -> vector<8x192xf32>
    %416 = vector.extract_strided_slice %257 {offsets = [56, 0], sizes = [8, 128], strides = [1, 1]} : vector<64x192xf32> to vector<8x128xf32>
    %417 = vector.extract_strided_slice %415 {offsets = [0, 0], sizes = [8, 128], strides = [1, 1]} : vector<8x192xf32> to vector<8x128xf32>
    %418 = arith.addf %416, %417 : vector<8x128xf32>
    %419 = arith.negf %418 : vector<8x128xf32>
    %420 = math.exp %419 : vector<8x128xf32>
    %cst_70 = arith.constant 1.000000e+00 : f32
    %421 = vector.broadcast %cst_70 : f32 to vector<8x128xf32>
    %422 = arith.addf %421, %420 : vector<8x128xf32>
    %423 = arith.divf %421, %422 : vector<8x128xf32>
    %424 = vector.extract_strided_slice %423 {offsets = [0, 0], sizes = [8, 64], strides = [1, 1]} : vector<8x128xf32> to vector<8x64xf32>
    %425 = vector.extract_strided_slice %423 {offsets = [0, 64], sizes = [8, 64], strides = [1, 1]} : vector<8x128xf32> to vector<8x64xf32>
    %426 = vector.extract_strided_slice %257 {offsets = [56, 128], sizes = [8, 64], strides = [1, 1]} : vector<64x192xf32> to vector<8x64xf32>
    %427 = vector.extract_strided_slice %415 {offsets = [0, 128], sizes = [8, 64], strides = [1, 1]} : vector<8x192xf32> to vector<8x64xf32>
    %428 = arith.addf %427, %259 : vector<8x64xf32>
    %429 = arith.mulf %424, %428 : vector<8x64xf32>
    %430 = arith.addf %426, %429 : vector<8x64xf32>
    %431 = math.tanh %430 : vector<8x64xf32>
    %432 = arith.subf %413, %431 : vector<8x64xf32>
    %433 = arith.mulf %425, %432 : vector<8x64xf32>
    %434 = arith.addf %431, %433 : vector<8x64xf32>
    %435 = arith.select %58, %434, %413 : vector<8x64xi1>, vector<8x64xf32>
    %436 = arith.select %61, %435, %414 : vector<8x64xi1>, vector<8x64xf32>
    %c0_71 = arith.constant 0 : index
    %c0_72 = arith.constant 0 : index
    %437 = vector.load %arg10[%c0_71, %c0_72] : memref<64x96xf32, #tpu.memory_space<vmem>>, vector<64x96xf32>
    %c0_73 = arith.constant 0 : index
    %c0_74 = arith.constant 0 : index
    %438 = vector.load %arg11[%c0_73, %c0_74] : memref<1x96xf32, #tpu.memory_space<vmem>>, vector<1x96xf32>
    %c0_75 = arith.constant 0 : index
    %c0_76 = arith.constant 0 : index
    %439 = vector.load %arg12[%c0_75, %c0_76] : memref<96x3xf32, #tpu.memory_space<vmem>>, vector<96x3xf32>
    %c0_77 = arith.constant 0 : index
    %c0_78 = arith.constant 0 : index
    %440 = vector.load %arg13[%c0_77, %c0_78] : memref<1x3xf32, #tpu.memory_space<vmem>>, vector<1x3xf32>
    %cst_79 = arith.constant dense<0.000000e+00> : vector<8x96xf32>
    %441 = tpu.matmul %436, %437, %cst_79 {dimension_numbers = #tpu.dot_dimension_numbers<[1], [0], [0], [1], [0, 0, 1, 1], [], []>} : vector<8x64xf32>, vector<64x96xf32>, vector<8x96xf32> -> vector<8x96xf32>
    %442 = vector.broadcast %438 : vector<1x96xf32> to vector<8x96xf32>
    %443 = arith.addf %441, %442 : vector<8x96xf32>
    %cst_80 = arith.constant 0.000000e+00 : f32
    %444 = vector.broadcast %cst_80 : f32 to vector<8x96xf32>
    %445 = arith.maximumf %443, %444 : vector<8x96xf32>
    %cst_81 = arith.constant dense<0.000000e+00> : vector<8x3xf32>
    %446 = tpu.matmul %445, %439, %cst_81 {dimension_numbers = #tpu.dot_dimension_numbers<[1], [0], [0], [1], [0, 0, 1, 1], [], []>} : vector<8x96xf32>, vector<96x3xf32>, vector<8x3xf32> -> vector<8x3xf32>
    %447 = vector.broadcast %440 : vector<1x3xf32> to vector<8x3xf32>
    %448 = arith.addf %446, %447 : vector<8x3xf32>
    %449 = arith.negf %448 : vector<8x3xf32>
    %450 = math.exp %449 : vector<8x3xf32>
    %cst_82 = arith.constant 1.000000e+00 : f32
    %451 = vector.broadcast %cst_82 : f32 to vector<8x3xf32>
    %452 = arith.addf %451, %450 : vector<8x3xf32>
    %453 = arith.divf %451, %452 : vector<8x3xf32>
    %c0_83 = arith.constant 0 : index
    %c0_84 = arith.constant 0 : index
    %454 = vector.load %arg14[%c0_83, %c0_84] : memref<8x3xf32, #tpu.memory_space<vmem>>, vector<8x3xf32>
    tpu.vector_store %arg14[%c0_83, %c0_84], %453 {strides = array<i32>} : memref<8x3xf32, #tpu.memory_space<vmem>>, vector<8x3xf32>,
    return
  }
}

</mosaic_0001>

<bundles_post_ra>
// kernel: custom_rnn_forward.1
= control target key start
LH: loop header
LB: loop body
LE: loop exit
PB: predicated region body
PF: predicated region fallthrough
CT: control target
= control target key end

     0   :  { %v2467_v3 = vmov 0.0   ;;  %vm124_vm0 = vcmask 261120   ;;  %v2468_v30 = vmov 0   ;;  %v51_v31 = vlaneseq  ;;  %s2469_s22 = smov 64   ;;  %s3635_s2 = inlined_call_operand.vmem [shape: f32[32,192], index: 2, kind: input, shape index: {}]   ;;  %s3636_s0 = inlined_call_operand.vmem [shape: f32[64,32], index: 0, kind: input, shape index: {}]   ;;  %s3637_s3 = inlined_call_operand.vmem [shape: f32[64,192], index: 3, kind: input, shape index: {}]   ;;  %s3638_s4 = inlined_call_operand.vmem [shape: f32[1,192], index: 4, kind: input, shape index: {}]   ;;  %s3639_s5 = inlined_call_operand.vmem [shape: f32[1,64], index: 5, kind: input, shape index: {}]   ;;  %s3640_s1 = inlined_call_operand.vmem [shape: s32[8,1], index: 1, kind: input, shape index: {}]   ;;  %s3641_s6 = inlined_call_operand.vmem [shape: f32[128,192], index: 6, kind: input, shape index: {}]   ;;  %s3642_s7 = inlined_call_operand.vmem [shape: f32[64,192], index: 7, kind: input, shape index: {}]   ;;  %s3643_s8 = inlined_call_operand.vmem [shape: f32[1,192], index: 8, kind: input, shape index: {}]   ;;  %s3644_s9 = inlined_call_operand.vmem [shape: f32[1,64], index: 9, kind: input, shape index: {}]   ;;  %s3645_s10 = inlined_call_operand.vmem [shape: f32[64,96], index: 10, kind: input, shape index: {}]   ;;  %s3646_s12 = inlined_call_operand.vmem [shape: f32[96,3], index: 12, kind: input, shape index: {}]   ;;  %s3647_s11 = inlined_call_operand.vmem [shape: f32[1,96], index: 11, kind: input, shape index: {}]   ;;  %s3648_s13 = inlined_call_operand.vmem [shape: f32[1,3], index: 13, kind: input, shape index: {}]   ;;  %s3649_s14 = inlined_call_operand.vmem [shape: f32[8,3], index: 14, kind: output, shape index: {}]  }
   0x1   :  { %v94_v0 = vld [vmem:[%s3635_s2 + $0x38] sm:$0xff]  ;;  %v93_v1 = vld [vmem:[%s3635_s2 + $0x30] sm:$0xff]  ;;  %v92_v2 = vld [vmem:[%s3635_s2 + $0x28] sm:$0xff]  ;;  %237 = vmatprep.mubr.f32.mxu1 %v2467_v3  ;;  %213 = vmatprep.mubr.f32.mxu0 %v2467_v3  ;;  %vm268_vm3 = vcmask 523264  }
   0x2   :  { %2347 = vmatprep.subr.mxu1 %v94_v0  ;;  %v91_v4 = vld [vmem:[%s3635_s2 + $0x20] sm:$0xff]  ;;  %173 = vmatprep.subr.mxu0 %v94_v0  ;;  %v90_v5 = vld [vmem:[%s3635_s2 + $0x18] sm:$0xff]  ;;  %v89_v6 = vld [vmem:[%s3635_s2 + $0x10] sm:$0xff]  ;;  %v2741_v34 = vshrl.u32 %v51_v31, 7 }
   0x3   :  { %2351 = vmatpush1.msra.mxu1 %v93_v1  ;;  %174 = vmatpush1.msra.mxu0 %v93_v1  ;;  %v88_v7 = vld [vmem:[%s3635_s2 + $0x8] sm:$0xff]  ;;  %v87_v8 = vld [vmem:[%s3635_s2] sm:$0xff]  ;;  %v2585_v10 = vld [vmem:[%s3637_s3 + $0x78] sm:$0xff] }
   0x4   :  { %2348 = vmatprep.subr.mxu1 %v92_v2  ;;  %175 = vmatprep.subr.mxu0 %v92_v2  ;;  %v83_v9 = vld [vmem:[%s3636_s0 + $0x20] sm:$0xff]  ;;  %v2590_v11 = vld [vmem:[%s3637_s3 + $0x70] sm:$0xff]  ;;  %v2595_v12 = vld [vmem:[%s3637_s3 + $0x68] sm:$0xff]  ;;  %v116_v37 = vsub.s32 0, %v2741_v34  ;;  %v120_v51 = vsub.s32 1, %v2741_v34 }
   0x5   :  { %2352 = vmatpush1.msra.mxu1 %v91_v4  ;;  %176 = vmatpush1.msra.mxu0 %v91_v4  ;;  %v79_v13 = vld [vmem:[%s3636_s0] sm:$0xff]  ;;  %v84_v15 = vld [vmem:[%s3636_s0 + $0x28] sm:$0xff]  ;;  %v2615_v16 = vld [vmem:[%s3637_s3 + $0x58] sm:$0xff]  ;;  %v2786_v4 = vand.u32 127, %v51_v31 }
   0x6   :  { %2349 = vmatprep.subr.mxu1 %v90_v5  ;;  %177 = vmatprep.subr.mxu0 %v90_v5  ;;  %v2605_v14 = vld [vmem:[%s3637_s3 + $0x60] sm:$0xff]  ;;  %v2621_v17 = vld [vmem:[%s3637_s3 + $0x50] sm:$0xff]  ;;  %v2628_v18 = vld [vmem:[%s3637_s3 + $0x48] sm:$0xff] }
   0x7   :  { %2353 = vmatpush1.msra.mxu1 %v89_v6  ;;  %178 = vmatpush1.msra.mxu0 %v89_v6  ;;  %v2636_v19 = vld [vmem:[%s3637_s3 + $0x40] sm:$0xff]  ;;  %v85_v20 = vld [vmem:[%s3636_s0 + $0x30] sm:$0xff]  ;;  %v2646_v21 = vld [vmem:[%s3637_s3 + $0x38] sm:$0xff]  ;;  %vm53_vm1 = vcmp.lt.s32.totalorder %v2786_v4, 32  ;;  %v2470_v6 = vmov 7  }
   0x8   :  { %2350 = vmatprep.subr.mxu1 %v88_v7  ;;  %179 = vmatprep.subr.mxu0 %v88_v7  ;;  %v2652_v22 = vld [vmem:[%s3637_s3 + $0x30] sm:$0xff]  ;;  %v2659_v23 = vld [vmem:[%s3637_s3 + $0x28] sm:$0xff]  ;;  %v2667_v24 = vld [vmem:[%s3637_s3 + $0x20] sm:$0xff]  ;;  %v2793_v7 = vsel %vm53_vm1, 0, %v2470_v6 }
   0x9   :  { %2354 = vmatpush1.msra.mxu1 %v87_v8  ;;  %180 = vmatpush1.msra.mxu0 %v87_v8  ;;  %v86_v25 = vld [vmem:[%s3636_s0 + $0x38] sm:$0xff]  ;;  %v2683_v27 = vld [vmem:[%s3637_s3 + $0x10] sm:$0xff]  ;;  %v2690_v28 = vld [vmem:[%s3637_s3 + $0x8] sm:$0xff] }
   0xa   :  { %2238 = vmatmul.mubr.msk.f32.vlgmr.msra.gmra.mxu1 %vm124_vm0, %v83_v9  ;;  %288 = vmatprep.subr.mxu1 %v2585_v10  ;;  %v2677_v26 = vld [vmem:[%s3637_s3 + $0x18] sm:$0xff]  ;;  %v2698_v29 = vld [vmem:[%s3637_s3] sm:$0xff]  ;;  %v80_v0 = vld [vmem:[%s3636_s0 + $0x8] sm:$0xff] }
   0xb   :  { %289 = vmatpush1.msra.mxu1 %v2590_v11  ;;  %243 = vmatprep.mubr.f32.mxu1 %v2467_v3  ;;  %v111_v38 = vld [vmem:[%s3638_s4] sm:$0x3] }
   0xc   :  { %290 = vmatprep.subr.mxu1 %v2595_v12  ;;  %2234 = vmatmul.mubr.msk.f32.vlgmr.msra.gmra.mxu0 %vm124_vm0, %v79_v13  ;;  %v2757_v41 = vrot.slane %v111_v38, %v116_v37  ;;  %v2768_v52 = vld [vmem:[%s3639_s5] ss:$0 sm:$0xff]  ;;  %v2772_v55 = vrot.slane %v111_v38, %v120_v51 }
   0xd   :  { %291 = vmatpush1.msra.mxu1 %v2605_v14  ;;  %219 = vmatprep.mubr.f32.mxu0 %v2467_v3  ;;  %v47_v63 = vld [vmem:[%s3640_s1] sm:$0xff] }
   0xe   :  { %2239 = vmatmul.mubr.msk.f32.gmra.mxu1 %vm124_vm0, %v84_v15  ;;  %292 = vmatprep.subr.mxu1 %v2615_v16 }
   0xf   :  { %293 = vmatpush1.msra.mxu1 %v2621_v17  ;;  %249 = vmatprep.mubr.f32.mxu1 %v2467_v3 }
  0x10   :  { %294 = vmatprep.subr.mxu1 %v2628_v18  ;;  %482 = vmatprep.subr.mxu0 %v2585_v10 }
  0x11   :  { %295 = vmatpush1.msra.mxu1 %v2636_v19  ;;  %483 = vmatpush1.msra.mxu0 %v2590_v11 }
  0x12   :  { %2240 = vmatmul.mubr.msk.f32.gmra.mxu1 %vm124_vm0, %v85_v20  ;;  %296 = vmatprep.subr.mxu1 %v2646_v21 }
  0x13   :  { %297 = vmatpush1.msra.mxu1 %v2652_v22  ;;  %255 = vmatprep.mubr.f32.mxu1 %v2467_v3 }
  0x14   :  { %298 = vmatprep.subr.mxu1 %v2659_v23  ;;  %484 = vmatprep.subr.mxu0 %v2595_v12 }
  0x15   :  { %299 = vmatpush1.msra.mxu1 %v2667_v24  ;;  %485 = vmatpush1.msra.mxu0 %v2605_v14 }
  0x16   :  { %2241 = vmatmul.mubr.msk.f32.gmra.mxu1 %vm124_vm0, %v86_v25  ;;  %300 = vmatprep.subr.mxu1 %v2677_v26 }
  0x17   :  { %301 = vmatpush1.msra.mxu1 %v2683_v27  ;;  %336 = vmatprep.mubr.f32.mxu1 %v2467_v3 }
  0x18   :  { %302 = vmatprep.subr.mxu1 %v2690_v28  ;;  %486 = vmatprep.subr.mxu0 %v2615_v16 }
  0x19   :  { %303 = vmatpush1.msra.mxu1 %v2698_v29  ;;  %487 = vmatpush1.msra.mxu0 %v2621_v17 }
  0x1a   :  { %337 = vmatmul.mubr.f32.vlgmr.msra.gmra.mxu1 %v2467_v3  ;;  %385 = vmatprep.subr.mxu1 %v2585_v10 }
  0x1b   :  { %386 = vmatpush1.msra.mxu1 %v2590_v11  ;;  %433 = vmatprep.mubr.f32.mxu1 %v2467_v3 }
  0x1c   :  { %387 = vmatprep.subr.mxu1 %v2595_v12  ;;  %488 = vmatprep.subr.mxu0 %v2628_v18 }
  0x1d   :  { %388 = vmatpush1.msra.mxu1 %v2605_v14  ;;  %489 = vmatpush1.msra.mxu0 %v2636_v19 }
  0x1e   :  { %389 = vmatprep.subr.mxu1 %v2615_v16  ;;  %490 = vmatprep.subr.mxu0 %v2646_v21 }
  0x1f   :  { %390 = vmatpush1.msra.mxu1 %v2621_v17  ;;  %491 = vmatpush1.msra.mxu0 %v2652_v22 }
  0x20   :  { %391 = vmatprep.subr.mxu1 %v2628_v18  ;;  %492 = vmatprep.subr.mxu0 %v2659_v23 }
  0x21   :  { %392 = vmatpush1.msra.mxu1 %v2636_v19  ;;  %493 = vmatpush1.msra.mxu0 %v2667_v24 }
  0x22   :  { %393 = vmatprep.subr.mxu1 %v2646_v21  ;;  %494 = vmatprep.subr.mxu0 %v2677_v26 }
  0x23   :  { %394 = vmatpush1.msra.mxu1 %v2652_v22  ;;  %495 = vmatpush1.msra.mxu0 %v2683_v27 }
  0x24   :  { %395 = vmatprep.subr.mxu1 %v2659_v23  ;;  %496 = vmatprep.subr.mxu0 %v2690_v28 }
  0x25   :  { %396 = vmatpush1.msra.mxu1 %v2667_v24  ;;  %497 = vmatpush1.msra.mxu0 %v2698_v29 }
  0x26   :  { %397 = vmatprep.subr.mxu1 %v2677_v26  ;;  %676 = vmatprep.subr.mxu0 %v2585_v10 }
  0x27   :  { %398 = vmatpush1.msra.mxu1 %v2683_v27  ;;  %2366 = vset.pattern.permute.xlu0 %v2468_v30 }
  0x28   :  { %399 = vmatprep.subr.mxu1 %v2690_v28  ;;  %2235 = vmatmul.mubr.msk.f32.gmra.mxu0 %vm124_vm0, %v80_v0 }
  0x29   :  { %400 = vmatpush1.msra.mxu1 %v2698_v29  ;;  %225 = vmatprep.mubr.f32.mxu0 %v2467_v3 }
  0x2a   :  { %579 = vmatprep.subr.mxu1 %v2585_v10 }
  0xca   :  { %v2737_v32 = vpop.f32.mrf.mxu1 }
  0xcc   :  { %v2739_v33 = vpop.f32.mrf.mxu1  ;;  %v215_v43 = vpop.f32.mrf.mxu0 }
  0xcd   :  { %v216_v44 = vadd.f32 %v215_v43, %v2757_v41 }
  0xce   :  { %v2743_v35 = vpop.f32.mrf.mxu1  ;;  %v217_v54 = vpop.f32.mrf.mxu0 }
  0xcf   :  { %v218_v58 = vadd.f32 %v217_v54, %v2772_v55 }
  0xd0   :  { %v2745_v36 = vpop.f32.mrf.mxu1 }
  0xd2   :  { %v2751_v39 = vpop.f32.mrf.mxu1 }
  0xd4   :  { %v2753_v40 = vpop.f32.mrf.mxu1 }
  0xd6   :  { %v2759_v42 = vpop.f32.mrf.mxu1 }
  0xd8   :  { %v2762_v45 = vpop.f32.mrf.mxu1 }
  0xda   :  { %v338_v46 = vpop.f32.mrf.mxu1 }
  0xdb   :  { %v343_v47 = vadd.f32 %v338_v46, %v216_v44 }
  0xdc   :  { %v340_v53 = vpop.f32.mrf.mxu1 }
  0xdd   :  { %v2243_v48 = vmul.f32 -1.442695, %v343_v47  ;;  %v350_v56 = vadd.f32 %v2768_v52, %v340_v53 }
  0xdf   :  { %2367 = vpow2.f32 %v2243_v48 }
  0xe8   :  { %v221_v15 = vpop.f32.mrf.mxu0 }
  0xe9   :  { %v222_v20 = vadd.f32 %v221_v15, %v2757_v41 }
  0xea   :  { %v223_v47 = vpop.f32.mrf.mxu0 }
  0xec   :  { %v2368_v49 = vpop.eup %2367 }
  0xed   :  { %v347_v50 = vadd.f32 1.0, %v2368_v49 }
  0xef   :  { %2369 = vrcp.f32 %v347_v50  ;;  %v224_v50 = vadd.f32 %v223_v47, %v2772_v55 }
  0xfc   :  { %v2370_v57 = vpop.eup %2369 }
  0xfd   :  { %v351_v59 = vmul.f32 %v2370_v57, %v350_v56  ;;  %v81_v56 = vld [vmem:[%s3636_s0 + $0x10] sm:$0xff] }
  0xfe   :  { %2236 = vmatmul.mubr.msk.f32.gmra.mxu0 %vm124_vm0, %v81_v56 }
  0xff   :  { %v352_v60 = vadd.f32 %v351_v59, %v218_v58  ;;  %231 = vmatprep.mubr.f32.mxu0 %v2467_v3 }
 0x101   :  { %2371 = vtanh.f32 %v352_v60 }
 0x10e   :  { %v2372_v61 = vpop.eup %2371 }
 0x10f   :  { %v354_v62 = vsub.f32 0.0, %v2372_v61 }
 0x111   :  { %356 = vrot.lane.b32.xlu0 %v354_v62, %s2469_s22  ;;  %v2471_v62 = vmov 6  }
 0x115   :  { %49 = vperm.xlu0 %2366, %v47_v63   ;;  %v2839_v63 = vsel %vm53_vm1, 1, %v2471_v62 }
 0x183   :  { %v357_v1 = vpop.permute.xlu0 %356 }
 0x184   :  { %v359_v2 = vmul.f32 %v2370_v57, %v357_v1  ;;  %v82_v57 = vld [vmem:[%s3636_s0 + $0x18] sm:$0xff] }
 0x185   :  { %2237 = vmatmul.mubr.msk.f32.gmra.mxu0 %vm124_vm0, %v82_v57 }
 0x186   :  { %361 = vrot.lane.b32.xlu1 %v359_v2, %s2469_s22  ;;  %530 = vmatprep.mubr.f32.mxu0 %v2467_v3 }
 0x190   :  { %v2789_v5 = vpop.permute.xlu0 %49 }
 0x191   :  { %vm55_vm2 = vcmp.lt.s32.totalorder %v2793_v7, %v2789_v5  ;;  %vm59_vm4 = vcmp.lt.s32.totalorder %v2839_v63, %v2789_v5 }
 0x1be   :  { %v227_v6 = vpop.f32.mrf.mxu0 }
 0x1f8   :  { %v362_v8 = vpop.permute.xlu1 %361 }
 0x1f9   :  { %v364_v9 = vadd.f32 %v2372_v61, %v362_v8  ;;  %v229_v8 = vpop.f32.mrf.mxu0 }
 0x1fb   :  { %v2800_v13 = vsel %vm55_vm2, %v364_v9, 0.0 }
 0x1fc   :  { %2244 = vmatmul.mubr.msk.f32.vlgmr.msra.gmra.mxu1 %vm268_vm3, %v2800_v13 }
 0x1fd   :  { %580 = vmatpush1.msra.mxu1 %v2590_v11  ;;  %627 = vmatprep.mubr.f32.mxu1 %v2467_v3 }
 0x1fe   :  { %581 = vmatprep.subr.mxu1 %v2595_v12 }
 0x1ff   :  { %582 = vmatpush1.msra.mxu1 %v2605_v14 }
 0x200   :  { %583 = vmatprep.subr.mxu1 %v2615_v16 }
 0x201   :  { %584 = vmatpush1.msra.mxu1 %v2621_v17 }
 0x202   :  { %585 = vmatprep.subr.mxu1 %v2628_v18 }
 0x203   :  { %586 = vmatpush1.msra.mxu1 %v2636_v19 }
 0x204   :  { %587 = vmatprep.subr.mxu1 %v2646_v21 }
 0x205   :  { %588 = vmatpush1.msra.mxu1 %v2652_v22 }
 0x206   :  { %589 = vmatprep.subr.mxu1 %v2659_v23 }
 0x207   :  { %590 = vmatpush1.msra.mxu1 %v2667_v24 }
 0x208   :  { %591 = vmatprep.subr.mxu1 %v2677_v26 }
 0x209   :  { %592 = vmatpush1.msra.mxu1 %v2683_v27 }
 0x20a   :  { %593 = vmatprep.subr.mxu1 %v2690_v28 }
 0x20b   :  { %594 = vmatpush1.msra.mxu1 %v2698_v29 }
 0x20c   :  { %773 = vmatprep.subr.mxu1 %v2585_v10 }
 0x245   :  { %v233_v9 = vpop.f32.mrf.mxu0 }
 0x247   :  { %v235_v15 = vpop.f32.mrf.mxu0 }
 0x2bc   :  { %v435_v25 = vpop.f32.mrf.mxu1 }
 0x2bd   :  { %v440_v31 = vadd.f32 %v435_v25, %v222_v20  ;;  %v228_v20 = vadd.f32 %v227_v6, %v2757_v41 }
 0x2be   :  { %v437_v46 = vpop.f32.mrf.mxu1 }
 0x2bf   :  { %v2245_v38 = vmul.f32 -1.442695, %v440_v31  ;;  %v447_v48 = vadd.f32 %v2768_v52, %v437_v46 }
 0x2c1   :  { %2373 = vpow2.f32 %v2245_v38 }
 0x2ce   :  { %v2374_v43 = vpop.eup %2373 }
 0x2cf   :  { %v444_v44 = vadd.f32 1.0, %v2374_v43 }
 0x2d1   :  { %2375 = vrcp.f32 %v444_v44 }
 0x2de   :  { %v2376_v49 = vpop.eup %2375 }
 0x2df   :  { %v448_v53 = vmul.f32 %v2376_v49, %v447_v48 }
 0x2e1   :  { %v449_v54 = vadd.f32 %v448_v53, %v224_v50 }
 0x2e3   :  { %2377 = vtanh.f32 %v449_v54 }
 0x2f0   :  { %v2378_v58 = vpop.eup %2377 }
 0x2f1   :  { %v451_v59 = vsub.f32 %v2800_v13, %v2378_v58 }
 0x2f3   :  { %453 = vrot.lane.b32.xlu1 %v451_v59, %s2469_s22  ;;  %v2472_v59 = vmov 5  }
 0x365   :  { %v454_v60 = vpop.permute.xlu1 %453 }
 0x366   :  { %v456_v61 = vmul.f32 %v2376_v49, %v454_v60  ;;  %v230_v49 = vadd.f32 %v229_v8, %v2772_v55  ;;  %v2876_v60 = vsel %vm53_vm1, 2, %v2472_v59 }
 0x367   :  { %vm62_vm5 = vcmp.lt.s32.totalorder %v2876_v60, %v2789_v5 }
 0x368   :  { %458 = vrot.lane.b32.xlu1 %v456_v61, %s2469_s22 }
 0x3da   :  { %v459_v0 = vpop.permute.xlu1 %458 }
 0x3db   :  { %v461_v1 = vadd.f32 %v2378_v58, %v459_v0 }
 0x3dd   :  { %v2847_v2 = vsel %vm59_vm4, %v461_v1, %v2800_v13  ;;  %v234_v1 = vadd.f32 %v233_v9, %v2757_v41 }
 0x3de   :  { %2246 = vmatmul.mubr.msk.f32.vlgmr.msra.gmra.mxu0 %vm268_vm3, %v2847_v2 }
 0x3df   :  { %677 = vmatpush1.msra.mxu0 %v2590_v11  ;;  %724 = vmatprep.mubr.f32.mxu0 %v2467_v3 }
 0x3e0   :  { %678 = vmatprep.subr.mxu0 %v2595_v12 }
 0x3e1   :  { %679 = vmatpush1.msra.mxu0 %v2605_v14 }
 0x3e2   :  { %680 = vmatprep.subr.mxu0 %v2615_v16 }
 0x3e3   :  { %681 = vmatpush1.msra.mxu0 %v2621_v17 }
 0x3e4   :  { %682 = vmatprep.subr.mxu0 %v2628_v18 }
 0x3e5   :  { %683 = vmatpush1.msra.mxu0 %v2636_v19 }
 0x3e6   :  { %684 = vmatprep.subr.mxu0 %v2646_v21 }
 0x3e7   :  { %685 = vmatpush1.msra.mxu0 %v2652_v22 }
 0x3e8   :  { %686 = vmatprep.subr.mxu0 %v2659_v23 }
 0x3e9   :  { %687 = vmatpush1.msra.mxu0 %v2667_v24 }
 0x3ea   :  { %688 = vmatprep.subr.mxu0 %v2677_v26 }
 0x3eb   :  { %689 = vmatpush1.msra.mxu0 %v2683_v27 }
 0x3ec   :  { %690 = vmatprep.subr.mxu0 %v2690_v28 }
 0x3ed   :  { %691 = vmatpush1.msra.mxu0 %v2698_v29 }
 0x3ee   :  { %870 = vmatprep.subr.mxu0 %v2585_v10 }
 0x49e   :  { %v532_v25 = vpop.f32.mrf.mxu0 }
 0x49f   :  { %v537_v31 = vadd.f32 %v532_v25, %v228_v20 }
 0x4a0   :  { %v534_v46 = vpop.f32.mrf.mxu0 }
 0x4a1   :  { %v2247_v38 = vmul.f32 -1.442695, %v537_v31  ;;  %v544_v47 = vadd.f32 %v2768_v52, %v534_v46  ;;  %v236_v46 = vadd.f32 %v235_v15, %v2772_v55 }
 0x4a3   :  { %2379 = vpow2.f32 %v2247_v38 }
 0x4b0   :  { %v2380_v43 = vpop.eup %2379 }
 0x4b1   :  { %v541_v44 = vadd.f32 1.0, %v2380_v43 }
 0x4b3   :  { %2381 = vrcp.f32 %v541_v44 }
 0x4c0   :  { %v2382_v48 = vpop.eup %2381 }
 0x4c1   :  { %v545_v50 = vmul.f32 %v2382_v48, %v544_v47 }
 0x4c3   :  { %v546_v53 = vadd.f32 %v545_v50, %v230_v49 }
 0x4c5   :  { %2383 = vtanh.f32 %v546_v53  ;;  %v2473_v53 = vmov 4  }
 0x4d2   :  { %v2384_v54 = vpop.eup %2383 }
 0x4d3   :  { %v548_v56 = vsub.f32 %v2847_v2, %v2384_v54 }
 0x4d5   :  { %550 = vrot.lane.b32.xlu0 %v548_v56, %s2469_s22 }
 0x547   :  { %v551_v57 = vpop.permute.xlu0 %550 }
 0x548   :  { %v553_v58 = vmul.f32 %v2382_v48, %v551_v57 }
 0x54a   :  { %555 = vrot.lane.b32.xlu1 %v553_v58, %s2469_s22  ;;  %v240_v58 = vadd.f32 %v2737_v32, %v2757_v41 }
 0x5bc   :  { %v556_v61 = vpop.permute.xlu1 %555 }
 0x5bd   :  { %v558_v62 = vadd.f32 %v2384_v54, %v556_v61  ;;  %v2913_v54 = vsel %vm53_vm1, 3, %v2473_v53 }
 0x5be   :  { %vm65_vm6 = vcmp.lt.s32.totalorder %v2913_v54, %v2789_v5 }
 0x5bf   :  { %v2884_v0 = vsel %vm62_vm5, %v558_v62, %v2847_v2 }
 0x5c0   :  { %2248 = vmatmul.mubr.msk.f32.vlgmr.msra.gmra.mxu1 %vm268_vm3, %v2884_v0 }
 0x5c1   :  { %774 = vmatpush1.msra.mxu1 %v2590_v11  ;;  %821 = vmatprep.mubr.f32.mxu1 %v2467_v3 }
 0x5c2   :  { %775 = vmatprep.subr.mxu1 %v2595_v12 }
 0x5c3   :  { %776 = vmatpush1.msra.mxu1 %v2605_v14 }
 0x5c4   :  { %777 = vmatprep.subr.mxu1 %v2615_v16 }
 0x5c5   :  { %778 = vmatpush1.msra.mxu1 %v2621_v17 }
 0x5c6   :  { %779 = vmatprep.subr.mxu1 %v2628_v18 }
 0x5c7   :  { %780 = vmatpush1.msra.mxu1 %v2636_v19 }
 0x5c8   :  { %781 = vmatprep.subr.mxu1 %v2646_v21 }
 0x5c9   :  { %782 = vmatpush1.msra.mxu1 %v2652_v22 }
 0x5ca   :  { %783 = vmatprep.subr.mxu1 %v2659_v23 }
 0x5cb   :  { %784 = vmatpush1.msra.mxu1 %v2667_v24 }
 0x5cc   :  { %785 = vmatprep.subr.mxu1 %v2677_v26 }
 0x5cd   :  { %786 = vmatpush1.msra.mxu1 %v2683_v27 }
 0x5ce   :  { %787 = vmatprep.subr.mxu1 %v2690_v28 }
 0x5cf   :  { %788 = vmatpush1.msra.mxu1 %v2698_v29 }
 0x5d0   :  { %967 = vmatprep.subr.mxu1 %v2585_v10 }
 0x680   :  { %v629_v6 = vpop.f32.mrf.mxu1 }
 0x681   :  { %v634_v8 = vadd.f32 %v629_v6, %v234_v1 }
 0x682   :  { %v631_v38 = vpop.f32.mrf.mxu1 }
 0x683   :  { %v2249_v20 = vmul.f32 -1.442695, %v634_v8  ;;  %v641_v43 = vadd.f32 %v2768_v52, %v631_v38 }
 0x685   :  { %2385 = vpow2.f32 %v2249_v20 }
 0x692   :  { %v2386_v25 = vpop.eup %2385 }
 0x693   :  { %v638_v31 = vadd.f32 1.0, %v2386_v25 }
 0x695   :  { %2387 = vrcp.f32 %v638_v31  ;;  %v242_v31 = vadd.f32 %v2739_v33, %v2772_v55 }
 0x6a2   :  { %v2388_v44 = vpop.eup %2387 }
 0x6a3   :  { %v642_v47 = vmul.f32 %v2388_v44, %v641_v43 }
 0x6a5   :  { %v643_v48 = vadd.f32 %v642_v47, %v236_v46 }
 0x6a7   :  { %2389 = vtanh.f32 %v643_v48  ;;  %v2474_v48 = vmov 3  }
 0x6b4   :  { %v2390_v49 = vpop.eup %2389 }
 0x6b5   :  { %v645_v10 = vsub.f32 %v2884_v0, %v2390_v49 }
 0x6b7   :  { %647 = vrot.lane.b32.xlu0 %v645_v10, %s2469_s22 }
 0x729   :  { %v648_v9 = vpop.permute.xlu0 %647 }
 0x72a   :  { %v650_v50 = vmul.f32 %v2388_v44, %v648_v9 }
 0x72c   :  { %652 = vrot.lane.b32.xlu1 %v650_v50, %s2469_s22  ;;  %v2475_v50 = vmov 2  }
 0x72d   :  { %v2989_v53 = vsel %vm53_vm1, 5, %v2475_v50  ;;  %v1071_v50 = vld [vmem:[%s3641_s6 + $0xd0] sm:$0xff] }
 0x72e   :  { %vm71_vm8 = vcmp.lt.s32.totalorder %v2989_v53, %v2789_v5 }
 0x79e   :  { %v653_v56 = vpop.permute.xlu1 %652 }
 0x79f   :  { %v655_v57 = vadd.f32 %v2390_v49, %v653_v56  ;;  %v2951_v49 = vsel %vm53_vm1, 4, %v2474_v48 }
 0x7a0   :  { %vm68_vm7 = vcmp.lt.s32.totalorder %v2951_v49, %v2789_v5 }
 0x7a1   :  { %v2921_v15 = vsel %vm65_vm6, %v655_v57, %v2884_v0 }
 0x7a2   :  { %2250 = vmatmul.mubr.msk.f32.vlgmr.msra.gmra.mxu0 %vm268_vm3, %v2921_v15 }
 0x7a3   :  { %871 = vmatpush1.msra.mxu0 %v2590_v11  ;;  %918 = vmatprep.mubr.f32.mxu0 %v2467_v3 }
 0x7a4   :  { %872 = vmatprep.subr.mxu0 %v2595_v12 }
 0x7a5   :  { %873 = vmatpush1.msra.mxu0 %v2605_v14 }
 0x7a6   :  { %874 = vmatprep.subr.mxu0 %v2615_v16 }
 0x7a7   :  { %875 = vmatpush1.msra.mxu0 %v2621_v17 }
 0x7a8   :  { %876 = vmatprep.subr.mxu0 %v2628_v18 }
 0x7a9   :  { %877 = vmatpush1.msra.mxu0 %v2636_v19 }
 0x7aa   :  { %878 = vmatprep.subr.mxu0 %v2646_v21 }
 0x7ab   :  { %879 = vmatpush1.msra.mxu0 %v2652_v22 }
 0x7ac   :  { %880 = vmatprep.subr.mxu0 %v2659_v23 }
 0x7ad   :  { %881 = vmatpush1.msra.mxu0 %v2667_v24 }
 0x7ae   :  { %882 = vmatprep.subr.mxu0 %v2677_v26 }
 0x7af   :  { %883 = vmatpush1.msra.mxu0 %v2683_v27 }
 0x7b0   :  { %884 = vmatprep.subr.mxu0 %v2690_v28 }
 0x7b1   :  { %885 = vmatpush1.msra.mxu0 %v2698_v29 }
 0x862   :  { %v726_v59 = vpop.f32.mrf.mxu0 }
 0x863   :  { %v731_v61 = vadd.f32 %v726_v59, %v240_v58  ;;  %v252_v58 = vadd.f32 %v2751_v39, %v2757_v41 }
 0x864   :  { %v728_v8 = vpop.f32.mrf.mxu0 }
 0x865   :  { %v2251_v62 = vmul.f32 -1.442695, %v731_v61  ;;  %v738_v20 = vadd.f32 %v2768_v52, %v728_v8 }
 0x867   :  { %2391 = vpow2.f32 %v2251_v62 }
 0x874   :  { %v2392_v1 = vpop.eup %2391 }
 0x875   :  { %v735_v6 = vadd.f32 1.0, %v2392_v1 }
 0x877   :  { %2393 = vrcp.f32 %v735_v6 }
 0x884   :  { %v2394_v25 = vpop.eup %2393 }
 0x885   :  { %v739_v38 = vmul.f32 %v2394_v25, %v738_v20 }
 0x887   :  { %v740_v43 = vadd.f32 %v739_v38, %v242_v31  ;;  %v254_v31 = vadd.f32 %v2753_v40, %v2772_v55 }
 0x889   :  { %2395 = vtanh.f32 %v740_v43 }
 0x896   :  { %v2396_v44 = vpop.eup %2395 }
 0x897   :  { %v742_v32 = vsub.f32 %v2921_v15, %v2396_v44 }
 0x899   :  { %744 = vrot.lane.b32.xlu0 %v742_v32, %s2469_s22 }
 0x90b   :  { %v745_v46 = vpop.permute.xlu0 %744 }
 0x90c   :  { %v747_v47 = vmul.f32 %v2394_v25, %v745_v46 }
 0x90e   :  { %749 = vrot.lane.b32.xlu1 %v747_v47, %s2469_s22  ;;  %v2476_v47 = vmov 1  }
 0x90f   :  { %v3012_v48 = vsel %vm53_vm1, 6, %v2476_v47  ;;  %v1061_v47 = vld [vmem:[%s3641_s6 + $0x80] sm:$0xff] }
 0x910   :  { %vm74_vm9 = vcmp.lt.s32.totalorder %v3012_v48, %v2789_v5 }
 0x980   :  { %v750_v10 = vpop.permute.xlu1 %749 }
 0x981   :  { %v752_v9 = vadd.f32 %v2396_v44, %v750_v10 }
 0x983   :  { %v2959_v33 = vsel %vm68_vm7, %v752_v9, %v2921_v15 }
 0x984   :  { %2252 = vmatmul.mubr.msk.f32.vlgmr.msra.gmra.mxu1 %vm268_vm3, %v2959_v33 }
 0x985   :  { %968 = vmatpush1.msra.mxu1 %v2590_v11  ;;  %1015 = vmatprep.mubr.f32.mxu1 %v2467_v3  ;;  %v246_v11 = vadd.f32 %v2743_v35, %v2757_v41 }
 0x986   :  { %969 = vmatprep.subr.mxu1 %v2595_v12 }
 0x987   :  { %970 = vmatpush1.msra.mxu1 %v2605_v14 }
 0x988   :  { %971 = vmatprep.subr.mxu1 %v2615_v16 }
 0x989   :  { %972 = vmatpush1.msra.mxu1 %v2621_v17 }
 0x98a   :  { %973 = vmatprep.subr.mxu1 %v2628_v18 }
 0x98b   :  { %974 = vmatpush1.msra.mxu1 %v2636_v19 }
 0x98c   :  { %975 = vmatprep.subr.mxu1 %v2646_v21 }
 0x98d   :  { %976 = vmatpush1.msra.mxu1 %v2652_v22 }
 0x98e   :  { %977 = vmatprep.subr.mxu1 %v2659_v23  ;;  %v248_v23 = vadd.f32 %v2745_v36, %v2772_v55 }
 0x98f   :  { %978 = vmatpush1.msra.mxu1 %v2667_v24 }
 0x990   :  { %979 = vmatprep.subr.mxu1 %v2677_v26 }
 0x991   :  { %980 = vmatpush1.msra.mxu1 %v2683_v27 }
 0x992   :  { %981 = vmatprep.subr.mxu1 %v2690_v28 }
 0x993   :  { %982 = vmatpush1.msra.mxu1 %v2698_v29 }
 0xa44   :  { %v823_v12 = vpop.f32.mrf.mxu1 }
 0xa45   :  { %v828_v14 = vadd.f32 %v823_v12, %v246_v11  ;;  %v258_v11 = vadd.f32 %v2759_v42, %v2757_v41  ;;  %v1076_v42 = vld [vmem:[%s3641_s6 + $0xf8] sm:$0xff] }
 0xa46   :  { %v825_v19 = vpop.f32.mrf.mxu1  ;;  %1139 = vmatprep.subr.mxu0 %v1076_v42  ;;  %v1050_v42 = vld [vmem:[%s3641_s6 + $0x28] sm:$0xff] }
 0xa47   :  { %v2253_v16 = vmul.f32 -1.442695, %v828_v14  ;;  %v835_v21 = vadd.f32 %v2768_v52, %v825_v19 }
 0xa49   :  { %2397 = vpow2.f32 %v2253_v16 }
 0xa56   :  { %v2398_v17 = vpop.eup %2397 }
 0xa57   :  { %v832_v18 = vadd.f32 1.0, %v2398_v17 }
 0xa59   :  { %2399 = vrcp.f32 %v832_v18 }
 0xa66   :  { %v2400_v22 = vpop.eup %2399 }
 0xa67   :  { %v836_v24 = vmul.f32 %v2400_v22, %v835_v21 }
 0xa69   :  { %v837_v26 = vadd.f32 %v836_v24, %v248_v23  ;;  %v260_v23 = vadd.f32 %v2762_v45, %v2772_v55  ;;  %v1074_v45 = vld [vmem:[%s3641_s6 + $0xe8] sm:$0xff]  ;;  %v1073_v55 = vld [vmem:[%s3641_s6 + $0xe0] sm:$0xff] }
 0xa6b   :  { %2401 = vtanh.f32 %v837_v26 }
 0xa78   :  { %v2402_v27 = vpop.eup %2401 }
 0xa79   :  { %v839_v28 = vsub.f32 %v2959_v33, %v2402_v27 }
 0xa7b   :  { %841 = vrot.lane.b32.xlu0 %v839_v28, %s2469_s22 }
 0xaed   :  { %v842_v29 = vpop.permute.xlu0 %841 }
 0xaee   :  { %v844_v35 = vmul.f32 %v2400_v22, %v842_v29  ;;  %v1072_v29 = vld [vmem:[%s3641_s6 + $0xd8] sm:$0xff] }
 0xaf0   :  { %846 = vrot.lane.b32.xlu1 %v844_v35, %s2469_s22 }
 0xb62   :  { %v847_v56 = vpop.permute.xlu1 %846 }
 0xb63   :  { %v849_v57 = vadd.f32 %v2402_v27, %v847_v56  ;;  %v1070_v56 = vld [vmem:[%s3641_s6 + $0xc8] sm:$0xff] }
 0xb65   :  { %v2997_v36 = vsel %vm71_vm8, %v849_v57, %v2959_v33  ;;  %v1069_v57 = vld [vmem:[%s3641_s6 + $0xc0] sm:$0xff] }
 0xb66   :  { %2254 = vmatmul.mubr.msk.f32.vlgmr.msra.gmra.mxu0 %vm268_vm3, %v2997_v36 }
 0xb67   :  { %1203 = vmatprep.mubr.f32.mxu0 %v2467_v3 }
 0xc26   :  { %v920_v59 = vpop.f32.mrf.mxu0 }
 0xc27   :  { %v925_v61 = vadd.f32 %v920_v59, %v252_v58  ;;  %v1068_v58 = vld [vmem:[%s3641_s6 + $0xb8] sm:$0xff] }
 0xc28   :  { %v922_v8 = vpop.f32.mrf.mxu0  ;;  %v3066_v59 = vld [vmem:[%s3642_s7 + $0x78] sm:$0xff] }
 0xc29   :  { %v2255_v62 = vmul.f32 -1.442695, %v925_v61  ;;  %v932_v20 = vadd.f32 %v2768_v52, %v922_v8  ;;  %v3071_v61 = vld [vmem:[%s3642_s7 + $0x70] sm:$0xff]  ;;  %1274 = vmatprep.subr.mxu1 %v3066_v59  ;;  %v3089_v8 = vld [vmem:[%s3642_s7 + $0x60] sm:$0xff] }
 0xc2b   :  { %2403 = vpow2.f32 %v2255_v62  ;;  %v1067_v62 = vld [vmem:[%s3641_s6 + $0xb0] sm:$0xff] }
 0xc38   :  { %v2404_v1 = vpop.eup %2403 }
 0xc39   :  { %v929_v6 = vadd.f32 1.0, %v2404_v1  ;;  %v3080_v1 = vld [vmem:[%s3642_s7 + $0x68] sm:$0xff] }
 0xc3b   :  { %2405 = vrcp.f32 %v929_v6  ;;  %v1066_v6 = vld [vmem:[%s3641_s6 + $0xa8] sm:$0xff] }
 0xc48   :  { %v2406_v25 = vpop.eup %2405 }
 0xc49   :  { %v933_v38 = vmul.f32 %v2406_v25, %v932_v20  ;;  %v3094_v20 = vld [vmem:[%s3642_s7 + $0x58] sm:$0xff] }
 0xc4b   :  { %v934_v43 = vadd.f32 %v933_v38, %v254_v31  ;;  %v3103_v31 = vld [vmem:[%s3642_s7 + $0x50] sm:$0xff]  ;;  %v1064_v38 = vld [vmem:[%s3641_s6 + $0x98] sm:$0xff] }
 0xc4d   :  { %2407 = vtanh.f32 %v934_v43  ;;  %v3112_v43 = vld [vmem:[%s3642_s7 + $0x48] sm:$0xff] }
 0xc5a   :  { %v2408_v44 = vpop.eup %2407 }
 0xc5b   :  { %v936_v39 = vsub.f32 %v2997_v36, %v2408_v44 }
 0xc5d   :  { %938 = vrot.lane.b32.xlu0 %v936_v39, %s2469_s22  ;;  %v3121_v39 = vld [vmem:[%s3642_s7 + $0x40] sm:$0xff] }
 0xccf   :  { %v939_v32 = vpop.permute.xlu0 %938 }
 0xcd0   :  { %v941_v46 = vmul.f32 %v2406_v25, %v939_v32  ;;  %v1065_v25 = vld [vmem:[%s3641_s6 + $0xa0] sm:$0xff]  ;;  %v1062_v32 = vld [vmem:[%s3641_s6 + $0x88] sm:$0xff] }
 0xcd2   :  { %943 = vrot.lane.b32.xlu1 %v941_v46, %s2469_s22  ;;  %v3130_v46 = vld [vmem:[%s3642_s7 + $0x38] sm:$0xff] }
 0xd44   :  { %v944_v10 = vpop.permute.xlu1 %943 }
 0xd45   :  { %v946_v9 = vadd.f32 %v2408_v44, %v944_v10  ;;  %v1063_v44 = vld [vmem:[%s3641_s6 + $0x90] sm:$0xff] }
 0xd46   :  { %v3139_v10 = vld [vmem:[%s3642_s7 + $0x30] sm:$0xff] }
 0xd47   :  { %v3020_v40 = vsel %vm74_vm9, %v946_v9, %v2997_v36  ;;  %v1060_v9 = vld [vmem:[%s3641_s6 + $0x78] sm:$0xff] }
 0xd48   :  { %2256 = vmatmul.mubr.msk.f32.vlgmr.msra.gmra.mxu1 %vm268_vm3, %v3020_v40 }
 0xd49   :  { %1322 = vmatprep.mubr.f32.mxu1 %v2467_v3  ;;  %1275 = vmatpush1.msra.mxu1 %v3071_v61 }
 0xd4a   :  { %1276 = vmatprep.subr.mxu1 %v3080_v1 }
 0xd4b   :  { %1277 = vmatpush1.msra.mxu1 %v3089_v8 }
 0xd4c   :  { %1278 = vmatprep.subr.mxu1 %v3094_v20 }
 0xd4d   :  { %1279 = vmatpush1.msra.mxu1 %v3103_v31 }
 0xd4e   :  { %1280 = vmatprep.subr.mxu1 %v3112_v43 }
 0xd4f   :  { %1281 = vmatpush1.msra.mxu1 %v3121_v39 }
 0xd50   :  { %1282 = vmatprep.subr.mxu1 %v3130_v46 }
 0xd51   :  { %1283 = vmatpush1.msra.mxu1 %v3139_v10 }
 0xe08   :  { %v1017_v12 = vpop.f32.mrf.mxu1 }
 0xe09   :  { %v1022_v14 = vadd.f32 %v1017_v12, %v258_v11  ;;  %v3148_v11 = vld [vmem:[%s3642_s7 + $0x28] sm:$0xff]  ;;  %v1059_v12 = vld [vmem:[%s3641_s6 + $0x70] sm:$0xff] }
 0xe0a   :  { %v1019_v19 = vpop.f32.mrf.mxu1  ;;  %1284 = vmatprep.subr.mxu1 %v3148_v11 }
 0xe0b   :  { %v2257_v16 = vmul.f32 -1.442695, %v1022_v14  ;;  %v1029_v21 = vadd.f32 %v2768_v52, %v1019_v19  ;;  %v1075_v52 = vld [vmem:[%s3641_s6 + $0xf0] sm:$0xff]  ;;  %v3157_v14 = vld [vmem:[%s3642_s7 + $0x20] sm:$0xff] }
 0xe0c   :  { %1140 = vmatpush1.msra.mxu0 %v1075_v52  ;;  %v3175_v19 = vld [vmem:[%s3642_s7 + $0x10] sm:$0xff]  ;;  %1285 = vmatpush1.msra.mxu1 %v3157_v14  ;;  %v1049_v52 = vld [vmem:[%s3641_s6 + $0x20] sm:$0xff] }
 0xe0d   :  { %2409 = vpow2.f32 %v2257_v16  ;;  %1141 = vmatprep.subr.mxu0 %v1074_v45  ;;  %v1058_v16 = vld [vmem:[%s3641_s6 + $0x68] sm:$0xff]  ;;  %v1048_v45 = vld [vmem:[%s3641_s6 + $0x18] sm:$0xff] }
 0xe0e   :  { %1142 = vmatpush1.msra.mxu0 %v1073_v55  ;;  %v1047_v55 = vld [vmem:[%s3641_s6 + $0x10] sm:$0xff] }
 0xe0f   :  { %1143 = vmatprep.subr.mxu0 %v1072_v29  ;;  %v3216_v29 = vld [vmem:[%s3642_s7 + $0x8] sm:$0xff] }
 0xe10   :  { %1144 = vmatpush1.msra.mxu0 %v1071_v50  ;;  %v3225_v50 = vld [vmem:[%s3642_s7] sm:$0xff] }
 0xe11   :  { %1145 = vmatprep.subr.mxu0 %v1070_v56  ;;  %v3241_v56 = vsel %vm53_vm1, 7, %v2468_v30 }
 0xe12   :  { %1146 = vmatpush1.msra.mxu0 %v1069_v57  ;;  %vm77_vm10 = vcmp.lt.s32.totalorder %v3241_v56, %v2789_v5 }
 0xe13   :  { %1147 = vmatprep.subr.mxu0 %v1068_v58 }
 0xe14   :  { %1148 = vmatpush1.msra.mxu0 %v1067_v62 }
 0xe15   :  { %1149 = vmatprep.subr.mxu0 %v1066_v6 }
 0xe16   :  { %1150 = vmatpush1.msra.mxu0 %v1065_v25  ;;  %v1093_v25 = vld [vmem:[%s3643_s8] sm:$0x3] }
 0xe17   :  { %1151 = vmatprep.subr.mxu0 %v1064_v38  ;;  %v3293_v38 = vrot.slane %v1093_v25, %v116_v37  ;;  %v3303_v37 = vrot.slane %v1093_v25, %v120_v51 }
 0xe18   :  { %1152 = vmatpush1.msra.mxu0 %v1063_v44 }
 0xe19   :  { %1153 = vmatprep.subr.mxu0 %v1062_v32 }
 0xe1a   :  { %v2410_v17 = vpop.eup %2409  ;;  %1154 = vmatpush1.msra.mxu0 %v1061_v47 }
 0xe1b   :  { %v1026_v18 = vadd.f32 1.0, %v2410_v17  ;;  %v3166_v17 = vld [vmem:[%s3642_s7 + $0x18] sm:$0xff]  ;;  %1155 = vmatprep.subr.mxu0 %v1060_v9 }
 0xe1c   :  { %1156 = vmatpush1.msra.mxu0 %v1059_v12  ;;  %1286 = vmatprep.subr.mxu1 %v3166_v17 }
 0xe1d   :  { %2411 = vrcp.f32 %v1026_v18  ;;  %v1057_v18 = vld [vmem:[%s3641_s6 + $0x60] sm:$0xff]  ;;  %1157 = vmatprep.subr.mxu0 %v1058_v16  ;;  %1287 = vmatpush1.msra.mxu1 %v3175_v19 }
 0xe1e   :  { %1158 = vmatpush1.msra.mxu0 %v1057_v18  ;;  %1288 = vmatprep.subr.mxu1 %v3216_v29 }
 0xe1f   :  { %1289 = vmatpush1.msra.mxu1 %v3225_v50 }
 0xe20   :  { %1323 = vmatmul.mubr.f32.vlgmr.msra.gmra.mxu1 %v2467_v3  ;;  %1372 = vmatprep.subr.mxu1 %v3066_v59 }
 0xe21   :  { %1373 = vmatpush1.msra.mxu1 %v3071_v61  ;;  %1420 = vmatprep.mubr.f32.mxu1 %v2467_v3 }
 0xe22   :  { %1374 = vmatprep.subr.mxu1 %v3080_v1 }
 0xe23   :  { %1375 = vmatpush1.msra.mxu1 %v3089_v8 }
 0xe24   :  { %1376 = vmatprep.subr.mxu1 %v3094_v20 }
 0xe25   :  { %1377 = vmatpush1.msra.mxu1 %v3103_v31 }
 0xe26   :  { %1378 = vmatprep.subr.mxu1 %v3112_v43 }
 0xe27   :  { %1379 = vmatpush1.msra.mxu1 %v3121_v39 }
 0xe28   :  { %1380 = vmatprep.subr.mxu1 %v3130_v46 }
 0xe29   :  { %1381 = vmatpush1.msra.mxu1 %v3139_v10 }
 0xe2a   :  { %v2412_v22 = vpop.eup %2411  ;;  %1382 = vmatprep.subr.mxu1 %v3148_v11 }
 0xe2b   :  { %v1030_v24 = vmul.f32 %v2412_v22, %v1029_v21  ;;  %v1056_v21 = vld [vmem:[%s3641_s6 + $0x58] sm:$0xff]  ;;  %1383 = vmatpush1.msra.mxu1 %v3157_v14 }
 0xe2c   :  { %1159 = vmatprep.subr.mxu0 %v1056_v21  ;;  %1384 = vmatprep.subr.mxu1 %v3166_v17  ;;  %v3299_v21 = vld [vmem:[%s3644_s9] ss:$0 sm:$0xff] }
 0xe2d   :  { %v1031_v26 = vadd.f32 %v1030_v24, %v260_v23  ;;  %v1054_v23 = vld [vmem:[%s3641_s6 + $0x48] sm:$0xff]  ;;  %v1053_v24 = vld [vmem:[%s3641_s6 + $0x40] sm:$0xff]  ;;  %1385 = vmatpush1.msra.mxu1 %v3175_v19 }
 0xe2e   :  { %1386 = vmatprep.subr.mxu1 %v3216_v29 }
 0xe2f   :  { %2413 = vtanh.f32 %v1031_v26  ;;  %v1052_v26 = vld [vmem:[%s3641_s6 + $0x38] sm:$0xff]  ;;  %1387 = vmatpush1.msra.mxu1 %v3225_v50 }
 0xe30   :  { %1470 = vmatprep.subr.mxu1 %v3066_v59 }
 0xe3c   :  { %v3030_v27 = vpop.eup %2413 }
 0xe3d   :  { %v1033_v41 = vsub.f32 %v3020_v40, %v3030_v27 }
 0xe3f   :  { %1035 = vrot.lane.b32.xlu0 %v1033_v41, %s2469_s22  ;;  %v1051_v41 = vld [vmem:[%s3641_s6 + $0x30] sm:$0xff] }
 0xeb1   :  { %v1036_v28 = vpop.permute.xlu0 %1035 }
 0xeb2   :  { %v1038_v35 = vmul.f32 %v2412_v22, %v1036_v28  ;;  %v1055_v22 = vld [vmem:[%s3641_s6 + $0x50] sm:$0xff]  ;;  %v1046_v28 = vld [vmem:[%s3641_s6 + $0x8] sm:$0xff] }
 0xeb3   :  { %1160 = vmatpush1.msra.mxu0 %v1055_v22 }
 0xeb4   :  { %1040 = vrot.lane.b32.xlu1 %v1038_v35, %s2469_s22  ;;  %1161 = vmatprep.subr.mxu0 %v1054_v23  ;;  %v1045_v35 = vld [vmem:[%s3641_s6] sm:$0xff] }
 0xeb5   :  { %1162 = vmatpush1.msra.mxu0 %v1053_v24 }
 0xeb6   :  { %1163 = vmatprep.subr.mxu0 %v1052_v26 }
 0xeb7   :  { %1164 = vmatpush1.msra.mxu0 %v1051_v41 }
 0xeb8   :  { %1165 = vmatprep.subr.mxu0 %v1050_v42 }
 0xeb9   :  { %1166 = vmatpush1.msra.mxu0 %v1049_v52 }
 0xeba   :  { %1167 = vmatprep.subr.mxu0 %v1048_v45 }
 0xebb   :  { %1168 = vmatpush1.msra.mxu0 %v1047_v55 }
 0xebc   :  { %1169 = vmatprep.subr.mxu0 %v1046_v28 }
 0xebd   :  { %1170 = vmatpush1.msra.mxu0 %v1045_v35 }
 0xebe   :  { %1568 = vmatprep.subr.mxu0 %v3066_v59 }
 0xee0   :  { %v1324_v47 = vpop.f32.mrf.mxu1 }
 0xee2   :  { %v1326_v22 = vpop.f32.mrf.mxu1 }
 0xee3   :  { %v1336_v24 = vadd.f32 %v3299_v21, %v1326_v22 }
 0xf26   :  { %v1041_v57 = vpop.permute.xlu1 %1040 }
 0xf27   :  { %v1043_v58 = vadd.f32 %v3030_v27, %v1041_v57 }
 0xf29   :  { %v3254_v30 = vsel %vm77_vm10, %v1043_v58, %v3020_v40 }
 0xf2a   :  { %1096 = vrot.lane.b32.xlu0 %v3254_v30, %s2469_s22 }
 0xf2e   :  { %1100 = vrot.lane.b32.xlu0 %v3020_v40, %s2469_s22 }
 0xf9c   :  { %v1097_v4 = vpop.permute.xlu0 %1096 }
 0xf9d   :  { %v1099_v27 = vsel %vm268_vm3, %v2800_v13, %v1097_v4 }
 0xf9e   :  { %1204 = vmatmul.mubr.f32.vlgmr.msra.gmra.mxu0 %v1099_v27 }
 0xf9f   :  { %1209 = vmatprep.mubr.f32.mxu0 %v2467_v3  ;;  %1569 = vmatpush1.msra.mxu0 %v3071_v61 }
 0xfa0   :  { %v1101_v62 = vpop.permute.xlu0 %1100  ;;  %1570 = vmatprep.subr.mxu0 %v3080_v1 }
 0xfa1   :  { %v1103_v6 = vsel %vm268_vm3, %v2847_v2, %v1101_v62  ;;  %1571 = vmatpush1.msra.mxu0 %v3089_v8 }
 0xfa2   :  { %1210 = vmatmul.mubr.f32.gmra.mxu0 %v1103_v6  ;;  %1572 = vmatprep.subr.mxu0 %v3094_v20 }
 0xfa3   :  { %1215 = vmatprep.mubr.f32.mxu0 %v2467_v3  ;;  %1573 = vmatpush1.msra.mxu0 %v3103_v31 }
 0xfa4   :  { %1574 = vmatprep.subr.mxu0 %v3112_v43 }
 0xfa5   :  { %1575 = vmatpush1.msra.mxu0 %v3121_v39 }
 0xfa6   :  { %1576 = vmatprep.subr.mxu0 %v3130_v46 }
 0xfa7   :  { %1577 = vmatpush1.msra.mxu0 %v3139_v10 }
 0xfa8   :  { %1578 = vmatprep.subr.mxu0 %v3148_v11 }
 0xfa9   :  { %1579 = vmatpush1.msra.mxu0 %v3157_v14 }
 0xfaa   :  { %1580 = vmatprep.subr.mxu0 %v3166_v17 }
 0xfab   :  { %1581 = vmatpush1.msra.mxu0 %v3175_v19 }
 0xfac   :  { %1582 = vmatprep.subr.mxu0 %v3216_v29 }
 0xfad   :  { %1583 = vmatpush1.msra.mxu0 %v3225_v50 }
 0xfae   :  { %1764 = vmatprep.subr.mxu0 %v3066_v59 }
0x105e   :  { %v1205_v44 = vpop.f32.mrf.mxu0 }
0x105f   :  { %v1206_v32 = vadd.f32 %v1205_v44, %v3293_v38 }
0x1060   :  { %v1207_v23 = vpop.f32.mrf.mxu0 }
0x1061   :  { %v1329_v9 = vadd.f32 %v1324_v47, %v1206_v32  ;;  %v1208_v41 = vadd.f32 %v1207_v23, %v3303_v37 }
0x1062   :  { %v1211_v27 = vpop.f32.mrf.mxu0 }
0x1063   :  { %v2259_v12 = vmul.f32 -1.442695, %v1329_v9  ;;  %v1212_v62 = vadd.f32 %v1211_v27, %v3293_v38 }
0x1065   :  { %2415 = vpow2.f32 %v2259_v12  ;;  %v1213_v12 = vpop.f32.mrf.mxu0 }
0x1066   :  { %v1214_v22 = vadd.f32 %v1213_v12, %v3303_v37 }
0x1072   :  { %v2416_v16 = vpop.eup %2415 }
0x1073   :  { %v1333_v18 = vadd.f32 1.0, %v2416_v16 }
0x1075   :  { %2417 = vrcp.f32 %v1333_v18 }
0x1082   :  { %v2418_v26 = vpop.eup %2417 }
0x1083   :  { %v1337_v42 = vmul.f32 %v2418_v26, %v1336_v24 }
0x1085   :  { %v1338_v52 = vadd.f32 %v1337_v42, %v1208_v41 }
0x1087   :  { %2419 = vtanh.f32 %v1338_v52 }
0x1094   :  { %v2420_v45 = vpop.eup %2419 }
0x1095   :  { %v1340_v55 = vsub.f32 0.0, %v2420_v45 }
0x1097   :  { %1342 = vrot.lane.b32.xlu1 %v1340_v55, %s2469_s22 }
0x1109   :  { %v1343_v28 = vpop.permute.xlu1 %1342 }
0x110a   :  { %v1345_v35 = vmul.f32 %v2418_v26, %v1343_v28 }
0x110c   :  { %1347 = vrot.lane.b32.xlu1 %v1345_v35, %s2469_s22 }
0x1110   :  { %1104 = vrot.lane.b32.xlu1 %v2997_v36, %s2469_s22 }
0x117e   :  { %v1348_v34 = vpop.permute.xlu1 %1347 }
0x117f   :  { %v1350_v51 = vadd.f32 %v2420_v45, %v1348_v34  ;;  %v3347_v45 = vadd.s32 4294967295, %v2789_v5  ;;  %v2048_v5 = vld [vmem:[%s3646_s12] sm:$0xff] }
0x1181   :  { %v1351_v57 = vsel %vm55_vm2, %v1350_v51, 0.0  ;;  %vm57_vm11 = vcmp.eq.s32.totalorder %v2793_v7, %v3347_v45  ;;  %vm60_vm12 = vcmp.eq.s32.totalorder %v2839_v63, %v3347_v45  ;;  %vm63_vm13 = vcmp.eq.s32.totalorder %v2876_v60, %v3347_v45 }
0x1182   :  { %2260 = vmatmul.mubr.msk.f32.vlgmr.msra.gmra.mxu1 %vm268_vm3, %v1351_v57  ;;  %v1105_v58 = vpop.permute.xlu1 %1104  ;;  %v1352_v35 = vsel %vm57_vm11, %v1351_v57, 0.0  ;;  %vm66_vm14 = vcmp.eq.s32.totalorder %v2913_v54, %v3347_v45  ;;  %vm69_vm15 = vcmp.eq.s32.totalorder %v2951_v49, %v3347_v45  ;;  %vm72_vm0 = vcmp.eq.s32.totalorder %v2989_v53, %v3347_v45 }
0x1183   :  { %v1107_v4 = vsel %vm268_vm3, %v2884_v0, %v1105_v58  ;;  %1471 = vmatpush1.msra.mxu1 %v3071_v61  ;;  %1518 = vmatprep.mubr.f32.mxu1 %v2467_v3  ;;  %vm75_vm1 = vcmp.eq.s32.totalorder %v3012_v48, %v3347_v45  ;;  %vm2477_vm2 = vmmov 0  }
0x1184   :  { %1216 = vmatmul.mubr.f32.gmra.mxu0 %v1107_v4  ;;  %1472 = vmatprep.subr.mxu1 %v3080_v1 }
0x1185   :  { %1473 = vmatpush1.msra.mxu1 %v3089_v8  ;;  %1221 = vmatprep.mubr.f32.mxu0 %v2467_v3 }
0x1186   :  { %1474 = vmatprep.subr.mxu1 %v3094_v20 }
0x1187   :  { %1475 = vmatpush1.msra.mxu1 %v3103_v31 }
0x1188   :  { %1476 = vmatprep.subr.mxu1 %v3112_v43 }
0x1189   :  { %1477 = vmatpush1.msra.mxu1 %v3121_v39 }
0x118a   :  { %1478 = vmatprep.subr.mxu1 %v3130_v46 }
0x118b   :  { %1479 = vmatpush1.msra.mxu1 %v3139_v10 }
0x118c   :  { %1480 = vmatprep.subr.mxu1 %v3148_v11 }
0x118d   :  { %1481 = vmatpush1.msra.mxu1 %v3157_v14 }
0x118e   :  { %1482 = vmatprep.subr.mxu1 %v3166_v17 }
0x118f   :  { %1483 = vmatpush1.msra.mxu1 %v3175_v19 }
0x1190   :  { %1484 = vmatprep.subr.mxu1 %v3216_v29 }
0x1191   :  { %1485 = vmatpush1.msra.mxu1 %v3225_v50 }
0x1192   :  { %1666 = vmatprep.subr.mxu1 %v3066_v59 }
0x1242   :  { %v1422_v6 = vpop.f32.mrf.mxu1 }
0x1243   :  { %v1427_v25 = vadd.f32 %v1422_v6, %v1212_v62 }
0x1244   :  { %v1424_v9 = vpop.f32.mrf.mxu1  ;;  %v1217_v7 = vpop.f32.mrf.mxu0 }
0x1245   :  { %v2261_v44 = vmul.f32 -1.442695, %v1427_v25  ;;  %v1434_v16 = vadd.f32 %v3299_v21, %v1424_v9  ;;  %v1218_v63 = vadd.f32 %v1217_v7, %v3293_v38 }
0x1246   :  { %v1219_v25 = vpop.f32.mrf.mxu0 }
0x1247   :  { %2421 = vpow2.f32 %v2261_v44 }
0x1254   :  { %v2422_v32 = vpop.eup %2421 }
0x1255   :  { %v1431_v47 = vadd.f32 1.0, %v2422_v32 }
0x1257   :  { %2423 = vrcp.f32 %v1431_v47  ;;  %v1220_v47 = vadd.f32 %v1219_v25, %v3303_v37 }
0x1264   :  { %v2424_v18 = vpop.eup %2423 }
0x1265   :  { %v1435_v23 = vmul.f32 %v2424_v18, %v1434_v16 }
0x1267   :  { %v1436_v24 = vadd.f32 %v1435_v23, %v1214_v22 }
0x1269   :  { %2425 = vtanh.f32 %v1436_v24 }
0x1276   :  { %v2426_v26 = vpop.eup %2425 }
0x1277   :  { %v1438_v41 = vsub.f32 %v1351_v57, %v2426_v26 }
0x1279   :  { %1440 = vrot.lane.b32.xlu0 %v1438_v41, %s2469_s22 }
0x12eb   :  { %v1441_v42 = vpop.permute.xlu0 %1440 }
0x12ec   :  { %v1443_v52 = vmul.f32 %v2424_v18, %v1441_v42 }
0x12ee   :  { %1445 = vrot.lane.b32.xlu0 %v1443_v52, %s2469_s22 }
0x12f2   :  { %1108 = vrot.lane.b32.xlu0 %v2959_v33, %s2469_s22 }
0x12f6   :  { %1116 = vrot.lane.b32.xlu0 %v2884_v0, %s2469_s22 }
0x12fa   :  { %1124 = vrot.lane.b32.xlu0 %v2800_v13, %s2469_s22 }
0x1360   :  { %v1446_v55 = vpop.permute.xlu0 %1445 }
0x1361   :  { %v1448_v28 = vadd.f32 %v2426_v26, %v1446_v55 }
0x1363   :  { %v3356_v34 = vsel %vm59_vm4, %v1448_v28, %v1351_v57  ;;  %vm78_vm4 = vcmp.eq.s32.totalorder %v3241_v56, %v3347_v45  ;;  %v2274_v56 = vld [vmem:[%s3647_s11] ss:$0 sm:$0xff] }
0x1364   :  { %v3359_v0 = vsel %vm60_vm12, %v3356_v34, %v1352_v35  ;;  %2262 = vmatmul.mubr.msk.f32.vlgmr.msra.gmra.mxu1 %vm268_vm3, %v3356_v34  ;;  %v1109_v13 = vpop.permute.xlu0 %1108 }
0x1365   :  { %v1111_v51 = vsel %vm268_vm3, %v2921_v15, %v1109_v13  ;;  %1667 = vmatpush1.msra.mxu1 %v3071_v61  ;;  %1714 = vmatprep.mubr.f32.mxu1 %v2467_v3 }
0x1366   :  { %1222 = vmatmul.mubr.f32.gmra.mxu0 %v1111_v51  ;;  %1668 = vmatprep.subr.mxu1 %v3080_v1 }
0x1367   :  { %1227 = vmatprep.mubr.f32.mxu0 %v2467_v3  ;;  %1669 = vmatpush1.msra.mxu1 %v3089_v8 }
0x1368   :  { %1670 = vmatprep.subr.mxu1 %v3094_v20  ;;  %v1117_v41 = vpop.permute.xlu0 %1116 }
0x1369   :  { %1671 = vmatpush1.msra.mxu1 %v3103_v31  ;;  %v1119_v42 = vsel %vm268_vm3, %v2997_v36, %v1117_v41 }
0x136a   :  { %1672 = vmatprep.subr.mxu1 %v3112_v43 }
0x136b   :  { %1673 = vmatpush1.msra.mxu1 %v3121_v39 }
0x136c   :  { %1674 = vmatprep.subr.mxu1 %v3130_v46 }
0x136d   :  { %1675 = vmatpush1.msra.mxu1 %v3139_v10 }
0x136e   :  { %1676 = vmatprep.subr.mxu1 %v3148_v11 }
0x136f   :  { %1677 = vmatpush1.msra.mxu1 %v3157_v14 }
0x1370   :  { %1678 = vmatprep.subr.mxu1 %v3166_v17 }
0x1371   :  { %1679 = vmatpush1.msra.mxu1 %v3175_v19 }
0x1372   :  { %1680 = vmatprep.subr.mxu1 %v3216_v29 }
0x1373   :  { %1681 = vmatpush1.msra.mxu1 %v3225_v50 }
0x1374   :  { %1862 = vmatprep.subr.mxu1 %v3066_v59 }
0x1424   :  { %v1520_v57 = vpop.f32.mrf.mxu1 }
0x1425   :  { %v1525_v58 = vadd.f32 %v1520_v57, %v1218_v63 }
0x1426   :  { %v1522_v6 = vpop.f32.mrf.mxu1  ;;  %v1223_v60 = vpop.f32.mrf.mxu0 }
0x1427   :  { %v2263_v4 = vmul.f32 -1.442695, %v1525_v58  ;;  %v1532_v44 = vadd.f32 %v3299_v21, %v1522_v6  ;;  %v1224_v58 = vadd.f32 %v1223_v60, %v3293_v38 }
0x1429   :  { %2427 = vpow2.f32 %v2263_v4 }
0x1436   :  { %v2428_v27 = vpop.eup %2427 }
0x1437   :  { %v1529_v62 = vadd.f32 1.0, %v2428_v27 }
0x1439   :  { %2429 = vrcp.f32 %v1529_v62 }
0x1446   :  { %v2430_v32 = vpop.eup %2429 }
0x1447   :  { %v1533_v9 = vmul.f32 %v2430_v32, %v1532_v44 }
0x1449   :  { %v1534_v12 = vadd.f32 %v1533_v9, %v1220_v47 }
0x144b   :  { %2431 = vtanh.f32 %v1534_v12 }
0x1458   :  { %v2432_v16 = vpop.eup %2431 }
0x1459   :  { %v1536_v18 = vsub.f32 %v3356_v34, %v2432_v16 }
0x145b   :  { %1538 = vrot.lane.b32.xlu1 %v1536_v18, %s2469_s22 }
0x145f   :  { %1112 = vrot.lane.b32.xlu1 %v2921_v15, %s2469_s22  ;;  %v1125_v15 = vpop.permute.xlu0 %1124 }
0x1463   :  { %1120 = vrot.lane.b32.xlu1 %v2847_v2, %s2469_s22 }
0x14cd   :  { %v1539_v22 = vpop.permute.xlu1 %1538 }
0x14ce   :  { %v1541_v23 = vmul.f32 %v2430_v32, %v1539_v22 }
0x14d0   :  { %1543 = vrot.lane.b32.xlu1 %v1541_v23, %s2469_s22 }
0x14d1   :  { %v1113_v24 = vpop.permute.xlu1 %1112 }
0x14d2   :  { %v1115_v26 = vsel %vm268_vm3, %v2959_v33, %v1113_v24  ;;  %v1127_v33 = vsel %vm268_vm3, %v3254_v30, %v1125_v15  ;;  %v1225_v30 = vpop.f32.mrf.mxu0 }
0x14d3   :  { %1228 = vmatmul.mubr.f32.gmra.mxu0 %v1115_v26  ;;  %v1226_v47 = vadd.f32 %v1225_v30, %v3303_v37 }
0x14d4   :  { %1233 = vmatprep.mubr.f32.mxu0 %v2467_v3 }
0x14d5   :  { %v1121_v52 = vpop.permute.xlu1 %1120 }
0x14d6   :  { %v1123_v2 = vsel %vm268_vm3, %v3020_v40, %v1121_v52 }
0x14d7   :  { %1234 = vmatmul.mubr.f32.gmra.mxu0 %v1119_v42 }
0x14d8   :  { %1239 = vmatprep.mubr.f32.mxu0 %v2467_v3 }
0x14db   :  { %1240 = vmatmul.mubr.f32.gmra.mxu0 %v1123_v2 }
0x14dc   :  { %1245 = vmatprep.mubr.f32.mxu0 %v2467_v3 }
0x14df   :  { %1246 = vmatmul.mubr.f32.gmra.mxu0 %v1127_v33 }
0x14e0   :  { %1616 = vmatprep.mubr.f32.mxu0 %v2467_v3 }
0x1542   :  { %v1544_v55 = vpop.permute.xlu1 %1543 }
0x1543   :  { %v1546_v28 = vadd.f32 %v2432_v16, %v1544_v55 }
0x1545   :  { %v1547_v36 = vsel %vm62_vm5, %v1546_v28, %v3356_v34  ;;  %vm2227_vm5 = vcmask 23552  }
0x1546   :  { %v1548_v40 = vsel %vm63_vm13, %v1547_v36, %v3359_v0  ;;  %2264 = vmatmul.mubr.msk.f32.vlgmr.msra.gmra.mxu0 %vm268_vm3, %v1547_v36 }
0x1547   :  { %1765 = vmatpush1.msra.mxu0 %v3071_v61  ;;  %1812 = vmatprep.mubr.f32.mxu0 %v2467_v3 }
0x1548   :  { %1766 = vmatprep.subr.mxu0 %v3080_v1 }
0x1549   :  { %1767 = vmatpush1.msra.mxu0 %v3089_v8 }
0x154a   :  { %1768 = vmatprep.subr.mxu0 %v3094_v20 }
0x154b   :  { %1769 = vmatpush1.msra.mxu0 %v3103_v31 }
0x154c   :  { %1770 = vmatprep.subr.mxu0 %v3112_v43 }
0x154d   :  { %1771 = vmatpush1.msra.mxu0 %v3121_v39 }
0x154e   :  { %1772 = vmatprep.subr.mxu0 %v3130_v46 }
0x154f   :  { %1773 = vmatpush1.msra.mxu0 %v3139_v10 }
0x1550   :  { %1774 = vmatprep.subr.mxu0 %v3148_v11 }
0x1551   :  { %1775 = vmatpush1.msra.mxu0 %v3157_v14 }
0x1552   :  { %1776 = vmatprep.subr.mxu0 %v3166_v17 }
0x1553   :  { %1777 = vmatpush1.msra.mxu0 %v3175_v19 }
0x1554   :  { %1778 = vmatprep.subr.mxu0 %v3216_v29 }
0x1555   :  { %1779 = vmatpush1.msra.mxu0 %v3225_v50 }
0x1556   :  { %1960 = vmatprep.subr.mxu0 %v3066_v59 }
0x1593   :  { %v1229_v35 = vpop.f32.mrf.mxu0 }
0x1594   :  { %v1230_v54 = vadd.f32 %v1229_v35, %v3293_v38 }
0x1595   :  { %v1231_v34 = vpop.f32.mrf.mxu0 }
0x1596   :  { %v1232_v60 = vadd.f32 %v1231_v34, %v3303_v37 }
0x1597   :  { %v3430_v0 = vpop.f32.mrf.mxu0 }
0x1598   :  { %v1236_v49 = vadd.f32 %v3430_v0, %v3293_v38 }
0x1599   :  { %v3432_v13 = vpop.f32.mrf.mxu0 }
0x159b   :  { %v3434_v51 = vpop.f32.mrf.mxu0 }
0x159d   :  { %v3436_v7 = vpop.f32.mrf.mxu0 }
0x159e   :  { %v1244_v53 = vadd.f32 %v3436_v7, %v3303_v37 }
0x159f   :  { %v3438_v63 = vpop.f32.mrf.mxu0 }
0x15a1   :  { %v3440_v57 = vpop.f32.mrf.mxu0 }
0x1606   :  { %v1618_v4 = vpop.f32.mrf.mxu0 }
0x1607   :  { %v1623_v59 = vadd.f32 %v1618_v4, %v1224_v58 }
0x1608   :  { %v1620_v25 = vpop.f32.mrf.mxu0 }
0x1609   :  { %v2265_v27 = vmul.f32 -1.442695, %v1623_v59  ;;  %v1630_v44 = vadd.f32 %v3299_v21, %v1620_v25 }
0x160b   :  { %2433 = vpow2.f32 %v2265_v27 }
0x1618   :  { %v2434_v62 = vpop.eup %2433 }
0x1619   :  { %v1627_v6 = vadd.f32 1.0, %v2434_v62 }
0x161b   :  { %2435 = vrcp.f32 %v1627_v6 }
0x1628   :  { %v2436_v32 = vpop.eup %2435 }
0x1629   :  { %v1631_v9 = vmul.f32 %v2436_v32, %v1630_v44 }
0x162b   :  { %v1632_v12 = vadd.f32 %v1631_v9, %v1226_v47  ;;  %v1242_v47 = vadd.f32 %v3434_v51, %v3293_v38 }
0x162d   :  { %2437 = vtanh.f32 %v1632_v12 }
0x163a   :  { %v2438_v16 = vpop.eup %2437 }
0x163b   :  { %v1634_v18 = vsub.f32 %v1547_v36, %v2438_v16 }
0x163d   :  { %1636 = vrot.lane.b32.xlu0 %v1634_v18, %s2469_s22 }
0x16af   :  { %v1637_v22 = vpop.permute.xlu0 %1636 }
0x16b0   :  { %v1639_v23 = vmul.f32 %v2436_v32, %v1637_v22 }
0x16b2   :  { %1641 = vrot.lane.b32.xlu1 %v1639_v23, %s2469_s22 }
0x1724   :  { %v1642_v24 = vpop.permute.xlu1 %1641 }
0x1725   :  { %v1644_v26 = vadd.f32 %v2438_v16, %v1642_v24 }
0x1727   :  { %v1645_v41 = vsel %vm65_vm6, %v1644_v26, %v1547_v36 }
0x1728   :  { %v1646_v42 = vsel %vm66_vm14, %v1645_v41, %v1548_v40  ;;  %2266 = vmatmul.mubr.msk.f32.vlgmr.msra.gmra.mxu1 %vm268_vm3, %v1645_v41 }
0x1729   :  { %1863 = vmatpush1.msra.mxu1 %v3071_v61  ;;  %1910 = vmatprep.mubr.f32.mxu1 %v2467_v3 }
0x172a   :  { %1864 = vmatprep.subr.mxu1 %v3080_v1 }
0x172b   :  { %1865 = vmatpush1.msra.mxu1 %v3089_v8 }
0x172c   :  { %1866 = vmatprep.subr.mxu1 %v3094_v20 }
0x172d   :  { %1867 = vmatpush1.msra.mxu1 %v3103_v31 }
0x172e   :  { %1868 = vmatprep.subr.mxu1 %v3112_v43 }
0x172f   :  { %1869 = vmatpush1.msra.mxu1 %v3121_v39 }
0x1730   :  { %1870 = vmatprep.subr.mxu1 %v3130_v46 }
0x1731   :  { %1871 = vmatpush1.msra.mxu1 %v3139_v10 }
0x1732   :  { %1872 = vmatprep.subr.mxu1 %v3148_v11 }
0x1733   :  { %1873 = vmatpush1.msra.mxu1 %v3157_v14 }
0x1734   :  { %1874 = vmatprep.subr.mxu1 %v3166_v17 }
0x1735   :  { %1875 = vmatpush1.msra.mxu1 %v3175_v19 }
0x1736   :  { %1876 = vmatprep.subr.mxu1 %v3216_v29 }
0x1737   :  { %1877 = vmatpush1.msra.mxu1 %v3225_v50 }
0x1738   :  { %2301 = vmatprep.subr.mxu1 %v2467_v3 }
0x17e8   :  { %v1716_v52 = vpop.f32.mrf.mxu1 }
0x17e9   :  { %v1721_v2 = vadd.f32 %v1716_v52, %v1230_v54 }
0x17ea   :  { %v1718_v28 = vpop.f32.mrf.mxu1 }
0x17eb   :  { %v2267_v15 = vmul.f32 -1.442695, %v1721_v2  ;;  %v1728_v36 = vadd.f32 %v3299_v21, %v1718_v28  ;;  %v1248_v28 = vadd.f32 %v3438_v63, %v3293_v38  ;;  %v2046_v38 = vld [vmem:[%s3645_s10 + $0x38] sm:$0xff]  ;;  %v2045_v63 = vld [vmem:[%s3645_s10 + $0x30] sm:$0xff] }
0x17ed   :  { %2439 = vpow2.f32 %v2267_v15 }
0x17fa   :  { %v2440_v33 = vpop.eup %2439 }
0x17fb   :  { %v1725_v55 = vadd.f32 1.0, %v2440_v33 }
0x17fd   :  { %2441 = vrcp.f32 %v1725_v55 }
0x180a   :  { %v2442_v40 = vpop.eup %2441 }
0x180b   :  { %v1729_v30 = vmul.f32 %v2442_v40, %v1728_v36 }
0x180d   :  { %v1730_v58 = vadd.f32 %v1729_v30, %v1232_v60 }
0x180f   :  { %2443 = vtanh.f32 %v1730_v58 }
0x181c   :  { %v2444_v4 = vpop.eup %2443 }
0x181d   :  { %v1732_v59 = vsub.f32 %v1645_v41, %v2444_v4 }
0x181f   :  { %1734 = vrot.lane.b32.xlu0 %v1732_v59, %s2469_s22 }
0x1891   :  { %v1735_v35 = vpop.permute.xlu0 %1734 }
0x1892   :  { %v1737_v27 = vmul.f32 %v2442_v40, %v1735_v35  ;;  %v1250_v35 = vadd.f32 %v3440_v57, %v3303_v37  ;;  %v2042_v57 = vld [vmem:[%s3645_s10 + $0x18] sm:$0xff] }
0x1894   :  { %1739 = vrot.lane.b32.xlu1 %v1737_v27, %s2469_s22 }
0x1906   :  { %v1740_v62 = vpop.permute.xlu1 %1739 }
0x1907   :  { %v1742_v6 = vadd.f32 %v2444_v4, %v1740_v62 }
0x1909   :  { %v1743_v34 = vsel %vm68_vm7, %v1742_v6, %v1645_v41 }
0x190a   :  { %v1744_v25 = vsel %vm69_vm15, %v1743_v34, %v1646_v42  ;;  %2268 = vmatmul.mubr.msk.f32.vlgmr.msra.gmra.mxu0 %vm268_vm3, %v1743_v34 }
0x190b   :  { %1961 = vmatpush1.msra.mxu0 %v3071_v61  ;;  %2008 = vmatprep.mubr.f32.mxu0 %v2467_v3 }
0x190c   :  { %1962 = vmatprep.subr.mxu0 %v3080_v1 }
0x190d   :  { %1963 = vmatpush1.msra.mxu0 %v3089_v8 }
0x190e   :  { %1964 = vmatprep.subr.mxu0 %v3094_v20 }
0x190f   :  { %1965 = vmatpush1.msra.mxu0 %v3103_v31 }
0x1910   :  { %1966 = vmatprep.subr.mxu0 %v3112_v43 }
0x1911   :  { %1967 = vmatpush1.msra.mxu0 %v3121_v39 }
0x1912   :  { %1968 = vmatprep.subr.mxu0 %v3130_v46 }
0x1913   :  { %1969 = vmatpush1.msra.mxu0 %v3139_v10  ;;  %v1238_v10 = vadd.f32 %v3432_v13, %v3303_v37  ;;  %v2043_v37 = vld [vmem:[%s3645_s10 + $0x20] sm:$0xff] }
0x1914   :  { %1970 = vmatprep.subr.mxu0 %v3148_v11 }
0x1915   :  { %1971 = vmatpush1.msra.mxu0 %v3157_v14 }
0x1916   :  { %1972 = vmatprep.subr.mxu0 %v3166_v17 }
0x1917   :  { %1973 = vmatpush1.msra.mxu0 %v3175_v19 }
0x1918   :  { %1974 = vmatprep.subr.mxu0 %v3216_v29 }
0x1919   :  { %1975 = vmatpush1.msra.mxu0 %v3225_v50 }
0x191a   :  { %2320 = vmatprep.subr.mxu0 %v2467_v3 }
0x19ca   :  { %v1814_v61 = vpop.f32.mrf.mxu0 }
0x19cb   :  { %v1819_v1 = vadd.f32 %v1814_v61, %v1236_v49  ;;  %v2040_v49 = vld [vmem:[%s3645_s10 + $0x8] sm:$0xff]  ;;  %v2039_v61 = vld [vmem:[%s3645_s10] sm:$0xff] }
0x19cc   :  { %v1816_v43 = vpop.f32.mrf.mxu0 }
0x19cd   :  { %v2269_v8 = vmul.f32 -1.442695, %v1819_v1  ;;  %v1826_v39 = vadd.f32 %v3299_v21, %v1816_v43  ;;  %v2059_v1 = vld [vmem:[%s3646_s12 + $0x58] sm:$0xff] }
0x19cf   :  { %2445 = vpow2.f32 %v2269_v8  ;;  %v2058_v8 = vld [vmem:[%s3646_s12 + $0x50] sm:$0xff] }
0x19dc   :  { %v2446_v20 = vpop.eup %2445 }
0x19dd   :  { %v1823_v31 = vadd.f32 1.0, %v2446_v20  ;;  %v2057_v20 = vld [vmem:[%s3646_s12 + $0x48] sm:$0xff] }
0x19df   :  { %2447 = vrcp.f32 %v1823_v31  ;;  %v2056_v31 = vld [vmem:[%s3646_s12 + $0x40] sm:$0xff] }
0x19ec   :  { %v2448_v46 = vpop.eup %2447 }
0x19ed   :  { %v1827_v11 = vmul.f32 %v2448_v46, %v1826_v39 }
0x19ef   :  { %v1828_v14 = vadd.f32 %v1827_v11, %v1238_v10  ;;  %v2054_v10 = vld [vmem:[%s3646_s12 + $0x30] sm:$0xff]  ;;  %v2053_v11 = vld [vmem:[%s3646_s12 + $0x28] sm:$0xff] }
0x19f1   :  { %2449 = vtanh.f32 %v1828_v14  ;;  %v2052_v14 = vld [vmem:[%s3646_s12 + $0x20] sm:$0xff] }
0x19fe   :  { %v2450_v17 = vpop.eup %2449 }
0x19ff   :  { %v1830_v19 = vsub.f32 %v1743_v34, %v2450_v17 }
0x1a01   :  { %1832 = vrot.lane.b32.xlu0 %v1830_v19, %s2469_s22 }
0x1a73   :  { %v1833_v29 = vpop.permute.xlu0 %1832 }
0x1a74   :  { %v1835_v50 = vmul.f32 %v2448_v46, %v1833_v29  ;;  %v2055_v46 = vld [vmem:[%s3646_s12 + $0x38] sm:$0xff] }
0x1a76   :  { %1837 = vrot.lane.b32.xlu1 %v1835_v50, %s2469_s22 }
0x1ae8   :  { %v1838_v0 = vpop.permute.xlu1 %1837 }
0x1ae9   :  { %v1840_v44 = vadd.f32 %v2450_v17, %v1838_v0  ;;  %v2051_v17 = vld [vmem:[%s3646_s12 + $0x18] sm:$0xff] }
0x1aeb   :  { %v1841_v13 = vsel %vm71_vm8, %v1840_v44, %v1743_v34  ;;  %v2050_v44 = vld [vmem:[%s3646_s12 + $0x10] sm:$0xff] }
0x1aec   :  { %v1842_v32 = vsel %vm72_vm0, %v1841_v13, %v1744_v25  ;;  %2270 = vmatmul.mubr.msk.f32.vlgmr.msra.gmra.mxu1 %vm268_vm3, %v1841_v13  ;;  %v2041_v25 = vld [vmem:[%s3645_s10 + $0x10] sm:$0xff] }
0x1aed   :  { %2302 = vmatpush3.msra.mxu1 %v2046_v38  ;;  %2317 = vmatprep.mubr.msk.f32.mxu1 %vm2477_vm2, %v2467_v3 }
0x1aee   :  { %2303 = vmatprep.subr.mxu1 %v2467_v3 }
0x1aef   :  { %2304 = vmatpush3.msra.mxu1 %v2045_v63 }
0x1af0   :  { %2305 = vmatprep.subr.mxu1 %v2467_v3 }
0x1bac   :  { %v1912_v9 = vpop.f32.mrf.mxu1 }
0x1bad   :  { %v1917_v12 = vadd.f32 %v1912_v9, %v1242_v47 }
0x1bae   :  { %v1914_v23 = vpop.f32.mrf.mxu1 }
0x1baf   :  { %v2271_v16 = vmul.f32 -1.442695, %v1917_v12  ;;  %v1924_v24 = vadd.f32 %v3299_v21, %v1914_v23  ;;  %v2276_v12 = vld [vmem:[%s3648_s13] ss:$0 sm:$0xff] }
0x1bb1   :  { %2451 = vpow2.f32 %v2271_v16 }
0x1bbe   :  { %v2452_v18 = vpop.eup %2451 }
0x1bbf   :  { %v1921_v22 = vadd.f32 1.0, %v2452_v18 }
0x1bc1   :  { %2453 = vrcp.f32 %v1921_v22 }
0x1bce   :  { %v2454_v26 = vpop.eup %2453 }
0x1bcf   :  { %v1925_v41 = vmul.f32 %v2454_v26, %v1924_v24 }
0x1bd1   :  { %v1926_v42 = vadd.f32 %v1925_v41, %v1244_v53 }
0x1bd3   :  { %2455 = vtanh.f32 %v1926_v42 }
0x1be0   :  { %v2456_v54 = vpop.eup %2455 }
0x1be1   :  { %v1928_v52 = vsub.f32 %v1841_v13, %v2456_v54 }
0x1be3   :  { %1930 = vrot.lane.b32.xlu0 %v1928_v52, %s2469_s22 }
0x1c55   :  { %v1931_v51 = vpop.permute.xlu0 %1930 }
0x1c56   :  { %v1933_v2 = vmul.f32 %v2454_v26, %v1931_v51 }
0x1c58   :  { %1935 = vrot.lane.b32.xlu1 %v1933_v2, %s2469_s22 }
0x1cca   :  { %v1936_v15 = vpop.permute.xlu1 %1935 }
0x1ccb   :  { %v1938_v33 = vadd.f32 %v2456_v54, %v1936_v15 }
0x1ccd   :  { %v3523_v7 = vsel %vm74_vm9, %v1938_v33, %v1841_v13  ;;  %v2049_v13 = vld [vmem:[%s3646_s12 + $0x8] sm:$0xff] }
0x1cce   :  { %2272 = vmatmul.mubr.msk.f32.vlgmr.msra.gmra.mxu0 %vm268_vm3, %v3523_v7  ;;  %v3528_v55 = vsel %vm75_vm1, %v3523_v7, %v1842_v32 }
0x1ccf   :  { %2344 = vmatprep.mubr.msk.f32.mxu0 %vm2477_vm2, %v2467_v3  ;;  %2321 = vmatpush3.msra.mxu0 %v2059_v1 }
0x1cd0   :  { %2322 = vmatprep.subr.mxu0 %v2467_v3 }
0x1cd1   :  { %2323 = vmatpush3.msra.mxu0 %v2058_v8 }
0x1cd2   :  { %2324 = vmatprep.subr.mxu0 %v2467_v3 }
0x1cd3   :  { %2325 = vmatpush3.msra.mxu0 %v2057_v20 }
0x1cd4   :  { %2326 = vmatprep.subr.mxu0 %v2467_v3 }
0x1cd5   :  { %2327 = vmatpush3.msra.mxu0 %v2056_v31 }
0x1cd6   :  { %2328 = vmatprep.subr.mxu0 %v2467_v3 }
0x1cd7   :  { %2329 = vmatpush3.msra.mxu0 %v2055_v46 }
0x1cd8   :  { %2330 = vmatprep.subr.mxu0 %v2467_v3 }
0x1cd9   :  { %2331 = vmatpush3.msra.mxu0 %v2054_v10 }
0x1cda   :  { %2332 = vmatprep.subr.mxu0 %v2467_v3 }
0x1cdb   :  { %2333 = vmatpush3.msra.mxu0 %v2053_v11 }
0x1cdc   :  { %2334 = vmatprep.subr.mxu0 %v2467_v3 }
0x1cdd   :  { %2335 = vmatpush3.msra.mxu0 %v2052_v14 }
0x1cde   :  { %2336 = vmatprep.subr.mxu0 %v2467_v3 }
0x1cdf   :  { %2337 = vmatpush3.msra.mxu0 %v2051_v17 }
0x1ce0   :  { %2338 = vmatprep.subr.mxu0 %v2467_v3 }
0x1ce1   :  { %2339 = vmatpush3.msra.mxu0 %v2050_v44 }
0x1ce2   :  { %2340 = vmatprep.subr.mxu0 %v2467_v3 }
0x1ce3   :  { %2341 = vmatpush3.msra.mxu0 %v2049_v13 }
0x1ce4   :  { %2342 = vmatprep.subr.mxu0 %v2467_v3 }
0x1ce5   :  { %2343 = vmatpush3.msra.mxu0 %v2048_v5 }
0x1d8e   :  { %v2010_v36 = vpop.f32.mrf.mxu0 }
0x1d8f   :  { %v2015_v40 = vadd.f32 %v2010_v36, %v1248_v28 }
0x1d90   :  { %v2012_v4 = vpop.f32.mrf.mxu0 }
0x1d91   :  { %v2273_v60 = vmul.f32 -1.442695, %v2015_v40  ;;  %v2022_v48 = vadd.f32 %v3299_v21, %v2012_v4  ;;  %v2044_v21 = vld [vmem:[%s3645_s10 + $0x28] sm:$0xff] }
0x1d92   :  { %2306 = vmatpush3.msra.mxu1 %v2044_v21 }
0x1d93   :  { %2457 = vpow2.f32 %v2273_v60  ;;  %2307 = vmatprep.subr.mxu1 %v2467_v3 }
0x1d94   :  { %2308 = vmatpush3.msra.mxu1 %v2043_v37 }
0x1d95   :  { %2309 = vmatprep.subr.mxu1 %v2467_v3 }
0x1d96   :  { %2310 = vmatpush3.msra.mxu1 %v2042_v57 }
0x1d97   :  { %2311 = vmatprep.subr.mxu1 %v2467_v3 }
0x1d98   :  { %2312 = vmatpush3.msra.mxu1 %v2041_v25 }
0x1d99   :  { %2313 = vmatprep.subr.mxu1 %v2467_v3 }
0x1d9a   :  { %2314 = vmatpush3.msra.mxu1 %v2040_v49 }
0x1d9b   :  { %2315 = vmatprep.subr.mxu1 %v2467_v3 }
0x1d9c   :  { %2316 = vmatpush3.msra.mxu1 %v2039_v61 }
0x1da0   :  { %v2458_v30 = vpop.eup %2457 }
0x1da1   :  { %v2019_v58 = vadd.f32 1.0, %v2458_v30 }
0x1da3   :  { %2459 = vrcp.f32 %v2019_v58 }
0x1db0   :  { %v2460_v59 = vpop.eup %2459 }
0x1db1   :  { %v2023_v27 = vmul.f32 %v2460_v59, %v2022_v48 }
0x1db3   :  { %v2024_v62 = vadd.f32 %v2023_v27, %v1250_v35 }
0x1db5   :  { %2461 = vtanh.f32 %v2024_v62 }
0x1dc2   :  { %v2462_v6 = vpop.eup %2461 }
0x1dc3   :  { %v2026_v34 = vsub.f32 %v3523_v7, %v2462_v6 }
0x1dc5   :  { %2028 = vrot.lane.b32.xlu0 %v2026_v34, %s2469_s22 }
0x1e37   :  { %v2029_v43 = vpop.permute.xlu0 %2028 }
0x1e38   :  { %v2031_v39 = vmul.f32 %v2460_v59, %v2029_v43 }
0x1e3a   :  { %2033 = vrot.lane.b32.xlu1 %v2031_v39, %s2469_s22 }
0x1eac   :  { %v2034_v19 = vpop.permute.xlu1 %2033 }
0x1ead   :  { %v2036_v29 = vadd.f32 %v2462_v6, %v2034_v19 }
0x1eaf   :  { %v2037_v50 = vsel %vm77_vm10, %v2036_v29, %v3523_v7 }
0x1eb0   :  { %v2038_v0 = vsel %vm78_vm4, %v2037_v50, %v3528_v55 }
0x1eb1   :  { %2318 = vmatmul.mubr.msk.f32.vlgmr.msra.gmra.mxu1 %vm268_vm3, %v2038_v0  ;;  %vm2147_vm3 = vcmask 785408  }
0x1f71   :  { %v2136_v45 = vpop.f32.mrf.mxu1 }
0x1f72   :  { %v2137_v32 = vadd.f32 %v2274_v56, %v2136_v45 }
0x1f73   :  { %v2319_v47 = vpop.f32.mrf.mxu1 }
0x1f74   :  { %v2140_v9 = vmax.f32 %v2137_v32, 0.0 }
0x1f76   :  { %2345 = vmatmul.mubr.msk.f32.vlgmr.msra.gmra.mxu0 %vm2147_vm3, %v2140_v9 }
0x2036   :  { %v2217_v3 = vpop.f32.mrf.mxu0 }
0x2037   :  { %v2218_v16 = vadd.f32 %v2276_v12, %v2217_v3 }
0x2038   :  { %v2346_v18 = vpop.f32.mrf.mxu0 }
0x2039   :  { %v2278_v22 = vmul.f32 -1.442695, %v2218_v16 }
0x203b   :  { %2463 = vpow2.f32 %v2278_v22 }
0x2048   :  { %v2464_v23 = vpop.eup %2463 }
0x2049   :  { %v2224_v24 = vadd.f32 1.0, %v2464_v23 }
0x204b   :  { %2465 = vrcp.f32 %v2224_v24 }
0x2058   :  { %v2466_v26 = vpop.eup %2465 }
0x2059   :  { %2228 = vst.msk [vmem:[%s3649_s14] sm:$0xff] %vm2227_vm5, %v2466_v26 }

</bundles_post_ra>
